<compile_context>
chip_gen: v7x
topology: tpu7x:2x2x1
jax: 0.10.0
libtpu: 0.0.40
codegen_flags: <defaults>
</compile_context>

<pallas_src>
import functools

import numpy as np

import jax
import jax.numpy as jnp
from jax.experimental import pallas as pl
from jax.experimental.pallas import tpu as pltpu


def _round_up(n, m):
    return ((n + m - 1) // m) * m


# ---------------------------------------------------------------------------
# Fused kernel: the whole Embed forward for a pack of images per grid step.
# ---------------------------------------------------------------------------
def _embed_kernel(x_ref, mask_ref, w_in_ref, b_in_ref, w_blk_ref, b_blk_ref,
                  w_out_ref, b_out_ref, o_ref, slab_ref, *, layers, W, cp):
    # x_ref    : (1, 3, N)    3-channel input, N = images_per_step * H*W lanes
    # mask_ref : (9, N)       3x3-tap border-validity mask per lane (1.0 / 0.0)
    # w_*_ref  : (Cout, 9*cp) im2col-flattened conv weights (BN folded for blk)
    # b_*_ref  : (Cout, 1)    biases
    # o_ref    : (1, 3, N)    output (lane-dense stores)
    # slab_ref : (9*cp, N)    persistent im2col scratch slab (VMEM)
    N = slab_ref.shape[1]

    x3 = x_ref[0]                                    # (3, N)

    # The in_conv only fills 3 of the cp sublanes of each tap slot; zero the
    # slab once per grid step so the padded input channels stay zero.
    slab_ref[...] = jnp.zeros_like(slab_ref)

    # Hoist per-tap mask slices/broadcasts out of conv3x3 so they are not
    # re-emitted for every conv of every unrolled layer (no broadcast CSE).
    masks = mask_ref[...]                            # (9, N), loaded once
    mask_b = [None] * 9
    for t in range(9):
        if t != 4:                                   # center tap needs no mask
            mask_b[t] = jnp.broadcast_to(masks[t:t + 1, :], (cp, N))

    # Hoist bias broadcasts out of the residual loop as well.
    b_in = jnp.broadcast_to(b_in_ref[...], (cp, N))
    b_blk = jnp.broadcast_to(b_blk_ref[...], (cp, N))
    b_out = jnp.broadcast_to(b_out_ref[...], (3, N))

    shifts = tuple(dy * W + dx for dy in (-1, 0, 1) for dx in (-1, 0, 1))

    def conv3x3(src, w2d, b_full):
        # src: (rows, N) with rows <= cp.  8 masked lane-rolls written into the
        # persistent slab at static 8-aligned sublane offsets, then one MXU
        # matmul (Cout, 9*cp) x (9*cp, N).
        rows = src.shape[0]
        for t, s in enumerate(shifts):
            if s == 0:
                tap = src
            else:
                m = mask_b[t] if rows == cp else mask_b[t][:rows, :]
                tap = pltpu.roll(src, shift=(-s) % N, axis=1) * m
            slab_ref[t * cp:t * cp + rows, :] = tap
        return jnp.dot(w2d, slab_ref[...],
                       preferred_element_type=jnp.float32) + b_full

    # in_conv + ReLU, built directly from the 3 real input channels.
    fea = jnp.maximum(conv3x3(x3, w_in_ref[...], b_in), 0.0)

    # Residual blocks (all share one Conv/BN weight set, as in the PyTorch
    # module); fea stays VMEM/vreg-resident for the whole chain.
    w_blk = w_blk_ref[...]

    def block(_, f):
        return f + jnp.maximum(conv3x3(f, w_blk, b_blk), 0.0)

    fea = jax.lax.fori_loop(0, layers, block, fea, unroll=(layers <= 8))

    # out_conv + Sigmoid, residual with the input, clamp — all fused.
    out = jax.nn.sigmoid(conv3x3(fea, w_out_ref[...], b_out))
    o_ref[0] = jnp.clip(out + x3, 0.0001, 1.0)


# ---------------------------------------------------------------------------
# Wrapper: layout plumbing only (tiny passes over 3-channel data).
# ---------------------------------------------------------------------------
def _im2col_weight(w_hwio, cin_p, cout_p):
    """(3, 3, cin, cout) -> (cout_p, 9*cin_p), zero-padding channel dims."""
    kh, kw, cin, cout = w_hwio.shape
    wp = jnp.zeros((kh, kw, cin_p, cout_p), jnp.float32)
    wp = wp.at[:, :, :cin, :cout].set(w_hwio.astype(jnp.float32))
    # Flatten (ky, kx, ci) -> tap*cin_p + ci, matching the in-kernel tap order.
    return wp.reshape(kh * kw * cin_p, cout_p).T


def _bias_col(b, n):
    out = jnp.zeros((n, 1), jnp.float32)
    return out.at[:b.shape[0], 0].set(b.astype(jnp.float32))


def _tap_masks_np(H, W):
    """(9, H*W) float32: 1.0 where the 3x3 tap reads inside the image."""
    yy, xx = np.meshgrid(np.arange(H), np.arange(W), indexing="ij")
    rows = []
    for dy in (-1, 0, 1):
        for dx in (-1, 0, 1):
            valid = ((yy + dy >= 0) & (yy + dy < H) &
                     (xx + dx >= 0) & (xx + dx < W))
            rows.append(valid.reshape(-1))
    return np.stack(rows).astype(np.float32)


def embed_forward(x_nchw, params, layers):
    B, Cx, H, W = x_nchw.shape
    C = params["w_blk"].shape[-1]
    HW = H * W
    Cp = _round_up(max(C, Cx), 8)   # sublane-align the feature channel dim

    # Pack several images along the matmul/lane dimension per grid step to
    # amortize MXU weight pushes and per-grid-step overhead (the tap masks
    # make the cross-image roll wrap behave exactly like the image border).
    LANE_BUDGET = 4096
    bt = 1
    for cand in range(1, B + 1):
        if B % cand == 0 and cand * HW <= LANE_BUDGET:
            bt = cand
    G = B // bt
    N = bt * HW
    # TODO(synk): for large images (or to give v7x's two TensorCores >=2
    # parallel grid steps when G == 1), add a spatial row-tile grid axis with
    # a (layers + 2)-row recompute halo instead of whole images per step.

    # Fold BatchNorm (inference mode, running stats) into the block conv.
    # TODO(synk): PyTorch BatchNorm2d training-mode per-batch statistics are
    # not reproduced; this implements eval()/inference semantics.
    eps = 1e-5
    scale = params["bn_gamma"] * jax.lax.rsqrt(params["bn_var"] + eps)
    w_blk_f = params["w_blk"] * scale[None, None, None, :]
    b_blk_f = (params["b_blk"] - params["bn_mean"]) * scale + params["bn_beta"]

    w_in2d = _im2col_weight(params["w_in"], Cp, Cp)
    w_blk2d = _im2col_weight(w_blk_f, Cp, Cp)
    w_out2d = _im2col_weight(params["w_out"], Cp, 3)
    b_in2 = _bias_col(params["b_in"], Cp)
    b_blk2 = _bias_col(b_blk_f, Cp)
    b_out2 = _bias_col(params["b_out"], 3)

    masks = jnp.asarray(np.tile(_tap_masks_np(H, W), (1, bt)))     # (9, N)

    # NCHW -> (G, 3, bt*HW): a tiny one-time relayout over the 3-channel input
    # only — no Cp channel padding in HBM (that happens via the zeroed slab
    # inside the kernel).
    x_packed = (x_nchw.astype(jnp.float32)
                .reshape(G, bt, Cx, HW)
                .transpose(0, 2, 1, 3)
                .reshape(G, Cx, N))

    # Per-generation VMEM budget (~25% headroom) instead of a hard-coded cap.
    try:
        vmem_cap = int(pltpu.get_tpu_info().vmem_capacity_bytes)
    except Exception:
        vmem_cap = 64 * 1024 * 1024
    vmem_limit = (vmem_cap * 3) // 4

    kernel = functools.partial(_embed_kernel, layers=layers, W=W, cp=Cp)
    out_packed = pl.pallas_call(
        kernel,
        out_shape=jax.ShapeDtypeStruct((G, 3, N), jnp.float32),
        grid_spec=pltpu.PrefetchScalarGridSpec(
            num_scalar_prefetch=0,
            grid=(G,),
            in_specs=[
                pl.BlockSpec((1, Cx, N), lambda g: (g, 0, 0)),
                # Grid-invariant inputs (constant index_map -> DMA'd once,
                # stay VMEM-resident across the grid).
                pl.BlockSpec((9, N), lambda g: (0, 0)),
                pl.BlockSpec((Cp, 9 * Cp), lambda g: (0, 0)),
                pl.BlockSpec((Cp, 1), lambda g: (0, 0)),
                pl.BlockSpec((Cp, 9 * Cp), lambda g: (0, 0)),
                pl.BlockSpec((Cp, 1), lambda g: (0, 0)),
                pl.BlockSpec((3, 9 * Cp), lambda g: (0, 0)),
                pl.BlockSpec((3, 1), lambda g: (0, 0)),
            ],
            out_specs=pl.BlockSpec((1, 3, N), lambda g: (g, 0, 0)),
            scratch_shapes=[pltpu.VMEM((9 * Cp, N), jnp.float32)],
        ),
        compiler_params=pltpu.CompilerParams(
            dimension_semantics=("parallel",),
            vmem_limit_bytes=vmem_limit,
        ),
    )(x_packed, masks, w_in2d, b_in2, w_blk2d, b_blk2, w_out2d, b_out2)

    return (out_packed.reshape(G, 3, bt, HW)
            .transpose(0, 2, 1, 3)
            .reshape(B, 3, H, W))


# ---------------------------------------------------------------------------
# Parameters (deterministic, synthetic) and a pure-JAX reference.
# ---------------------------------------------------------------------------
def init_params(key, channels):
    ks = jax.random.split(key, 10)
    s = 0.1
    return {
        "w_in": s * jax.random.normal(ks[0], (3, 3, 3, channels), jnp.float32),
        "b_in": s * jax.random.normal(ks[1], (channels,), jnp.float32),
        "w_blk": s * jax.random.normal(ks[2], (3, 3, channels, channels), jnp.float32),
        "b_blk": s * jax.random.normal(ks[3], (channels,), jnp.float32),
        "bn_gamma": 1.0 + s * jax.random.normal(ks[4], (channels,), jnp.float32),
        "bn_beta": s * jax.random.normal(ks[5], (channels,), jnp.float32),
        "bn_mean": s * jax.random.normal(ks[6], (channels,), jnp.float32),
        "bn_var": 1.0 + s * jax.random.uniform(ks[7], (channels,), jnp.float32),
        "w_out": s * jax.random.normal(ks[8], (3, 3, channels, 3), jnp.float32),
        "b_out": s * jax.random.normal(ks[9], (3,), jnp.float32),
    }


def reference_forward(x_nchw, params, layers):
    """Pure-JAX/XLA reference of the Embed forward (BN in inference mode)."""
    dn = ("NCHW", "HWIO", "NCHW")

    def conv(x, w, b):
        y = jax.lax.conv_general_dilated(
            x, w, window_strides=(1, 1), padding="SAME",
            dimension_numbers=dn, precision=jax.lax.Precision.HIGHEST)
        return y + b[None, :, None, None]

    eps = 1e-5
    inv = params["bn_gamma"] / jnp.sqrt(params["bn_var"] + eps)
    fea = jax.nn.relu(conv(x_nchw, params["w_in"], params["b_in"]))
    for _ in range(layers):
        y = conv(fea, params["w_blk"], params["b_blk"])
        y = ((y - params["bn_mean"][None, :, None, None])
             * inv[None, :, None, None] + params["bn_beta"][None, :, None, None])
        fea = fea + jax.nn.relu(y)
    out = jax.nn.sigmoid(conv(fea, params["w_out"], params["b_out"]))
    return jnp.clip(out + x_nchw, 0.0001, 1.0)


if __name__ == "__main__":
    key = jax.random.PRNGKey(0)
    k_x, k_p = jax.random.split(key)

    layers = 2
    channels = 8
    B, H, W = 2, 16, 16

    # PyTorch-convention NCHW input in [0, 1] (image-like)
    x = jax.random.uniform(k_x, (B, 3, H, W), jnp.float32)
    params = init_params(k_p, channels)

    fwd = jax.jit(embed_forward, static_argnums=2)
    out = jax.block_until_ready(fwd(x, params, layers))
    ref = jax.block_until_ready(reference_forward(x, params, layers))

    assert out.shape == (B, 3, H, W), out.shape
    assert bool(jnp.all(out >= 0.0001)) and bool(jnp.all(out <= 1.0))
    np.testing.assert_allclose(np.asarray(out), np.asarray(ref),
                               rtol=5e-3, atol=5e-3)
    print("KERNEL_OK")
</pallas_src>

<mosaic_0001>
module attributes {stable_mosaic.version = 11 : i64} {
  func.func @_embed_kernel(%arg0: i32, %arg1: memref<1x3x512xf32, #tpu.memory_space<vmem>>, %arg2: memref<9x512xf32, #tpu.memory_space<vmem>>, %arg3: memref<8x72xf32, #tpu.memory_space<vmem>>, %arg4: memref<8x1xf32, #tpu.memory_space<vmem>>, %arg5: memref<8x72xf32, #tpu.memory_space<vmem>>, %arg6: memref<8x1xf32, #tpu.memory_space<vmem>>, %arg7: memref<3x72xf32, #tpu.memory_space<vmem>>, %arg8: memref<3x1xf32, #tpu.memory_space<vmem>>, %arg9: memref<1x3x512xf32, #tpu.memory_space<vmem>>, %arg10: memref<72x512xf32, #tpu.memory_space<vmem>>) attributes {dimension_semantics = [#tpu.dimension_semantics<parallel>], iteration_bounds = array<i64: 1>, scalar_prefetch = 0 : i64, scratch_operands = 1 : i64, tpu.core_type = #tpu.core_type<tc>, window_params = [{transform_indices = @transform_0, window_bounds = array<i64: 1, 3, 512>}, {pipeline_mode = #tpu.pipeline_mode<synchronous>, transform_indices = @transform_1, window_bounds = array<i64: 9, 512>}, {pipeline_mode = #tpu.pipeline_mode<synchronous>, transform_indices = @transform_2, window_bounds = array<i64: 8, 72>}, {pipeline_mode = #tpu.pipeline_mode<synchronous>, transform_indices = @transform_3, window_bounds = array<i64: 8, 1>}, {pipeline_mode = #tpu.pipeline_mode<synchronous>, transform_indices = @transform_4, window_bounds = array<i64: 8, 72>}, {pipeline_mode = #tpu.pipeline_mode<synchronous>, transform_indices = @transform_5, window_bounds = array<i64: 8, 1>}, {pipeline_mode = #tpu.pipeline_mode<synchronous>, transform_indices = @transform_6, window_bounds = array<i64: 3, 72>}, {pipeline_mode = #tpu.pipeline_mode<synchronous>, transform_indices = @transform_7, window_bounds = array<i64: 3, 1>}, {transform_indices = @transform_8, window_bounds = array<i64: 1, 3, 512>}]} {
    %c0 = arith.constant 0 : index
    %c0_0 = arith.constant 0 : index
    %c0_1 = arith.constant 0 : index
    %0 = vector.load %arg1[%c0, %c0_0, %c0_1] : memref<1x3x512xf32, #tpu.memory_space<vmem>>, vector<1x3x512xf32>
    %1 = vector.shape_cast %0 : vector<1x3x512xf32> to vector<3x512xf32>
    %cst = arith.constant 0.000000e+00 : f32
    %2 = vector.broadcast %cst : f32 to vector<72x512xf32>
    %c0_2 = arith.constant 0 : index
    %c0_3 = arith.constant 0 : index
    %3 = vector.load %arg10[%c0_2, %c0_3] : memref<72x512xf32, #tpu.memory_space<vmem>>, vector<72x512xf32>
    tpu.vector_store %arg10[%c0_2, %c0_3], %2 {strides = array<i32>} : memref<72x512xf32, #tpu.memory_space<vmem>>, vector<72x512xf32>,
    %c0_4 = arith.constant 0 : index
    %c0_5 = arith.constant 0 : index
    %4 = vector.load %arg2[%c0_4, %c0_5] : memref<9x512xf32, #tpu.memory_space<vmem>>, vector<9x512xf32>
    %5 = vector.extract_strided_slice %4 {offsets = [0, 0], sizes = [1, 512], strides = [1, 1]} : vector<9x512xf32> to vector<1x512xf32>
    %6 = vector.shape_cast %5 : vector<1x512xf32> to vector<1x512xf32>
    %7 = vector.broadcast %6 : vector<1x512xf32> to vector<8x512xf32>
    %8 = vector.extract_strided_slice %4 {offsets = [1, 0], sizes = [1, 512], strides = [1, 1]} : vector<9x512xf32> to vector<1x512xf32>
    %9 = vector.shape_cast %8 : vector<1x512xf32> to vector<1x512xf32>
    %10 = vector.broadcast %9 : vector<1x512xf32> to vector<8x512xf32>
    %11 = vector.extract_strided_slice %4 {offsets = [2, 0], sizes = [1, 512], strides = [1, 1]} : vector<9x512xf32> to vector<1x512xf32>
    %12 = vector.shape_cast %11 : vector<1x512xf32> to vector<1x512xf32>
    %13 = vector.broadcast %12 : vector<1x512xf32> to vector<8x512xf32>
    %14 = vector.extract_strided_slice %4 {offsets = [3, 0], sizes = [1, 512], strides = [1, 1]} : vector<9x512xf32> to vector<1x512xf32>
    %15 = vector.shape_cast %14 : vector<1x512xf32> to vector<1x512xf32>
    %16 = vector.broadcast %15 : vector<1x512xf32> to vector<8x512xf32>
    %17 = vector.extract_strided_slice %4 {offsets = [5, 0], sizes = [1, 512], strides = [1, 1]} : vector<9x512xf32> to vector<1x512xf32>
    %18 = vector.shape_cast %17 : vector<1x512xf32> to vector<1x512xf32>
    %19 = vector.broadcast %18 : vector<1x512xf32> to vector<8x512xf32>
    %20 = vector.extract_strided_slice %4 {offsets = [6, 0], sizes = [1, 512], strides = [1, 1]} : vector<9x512xf32> to vector<1x512xf32>
    %21 = vector.shape_cast %20 : vector<1x512xf32> to vector<1x512xf32>
    %22 = vector.broadcast %21 : vector<1x512xf32> to vector<8x512xf32>
    %23 = vector.extract_strided_slice %4 {offsets = [7, 0], sizes = [1, 512], strides = [1, 1]} : vector<9x512xf32> to vector<1x512xf32>
    %24 = vector.shape_cast %23 : vector<1x512xf32> to vector<1x512xf32>
    %25 = vector.broadcast %24 : vector<1x512xf32> to vector<8x512xf32>
    %26 = vector.extract_strided_slice %4 {offsets = [8, 0], sizes = [1, 512], strides = [1, 1]} : vector<9x512xf32> to vector<1x512xf32>
    %27 = vector.shape_cast %26 : vector<1x512xf32> to vector<1x512xf32>
    %28 = vector.broadcast %27 : vector<1x512xf32> to vector<8x512xf32>
    %c0_6 = arith.constant 0 : index
    %c0_7 = arith.constant 0 : index
    %29 = vector.load %arg4[%c0_6, %c0_7] : memref<8x1xf32, #tpu.memory_space<vmem>>, vector<8x1xf32>
    %30 = vector.shape_cast %29 : vector<8x1xf32> to vector<8x1xf32>
    %31 = vector.broadcast %30 : vector<8x1xf32> to vector<8x512xf32>
    %c0_8 = arith.constant 0 : index
    %c0_9 = arith.constant 0 : index
    %32 = vector.load %arg6[%c0_8, %c0_9] : memref<8x1xf32, #tpu.memory_space<vmem>>, vector<8x1xf32>
    %33 = vector.shape_cast %32 : vector<8x1xf32> to vector<8x1xf32>
    %34 = vector.broadcast %33 : vector<8x1xf32> to vector<8x512xf32>
    %c0_10 = arith.constant 0 : index
    %c0_11 = arith.constant 0 : index
    %35 = vector.load %arg8[%c0_10, %c0_11] : memref<3x1xf32, #tpu.memory_space<vmem>>, vector<3x1xf32>
    %36 = vector.shape_cast %35 : vector<3x1xf32> to vector<3x1xf32>
    %37 = vector.broadcast %36 : vector<3x1xf32> to vector<3x512xf32>
    %c0_12 = arith.constant 0 : index
    %c0_13 = arith.constant 0 : index
    %38 = vector.load %arg3[%c0_12, %c0_13] : memref<8x72xf32, #tpu.memory_space<vmem>>, vector<8x72xf32>
    %39 = vector.extract_strided_slice %7 {offsets = [0, 0], sizes = [3, 512], strides = [1, 1]} : vector<8x512xf32> to vector<3x512xf32>
    %c17_i32 = arith.constant 17 : i32
    %40 = tpu.dynamic_rotate %1 by %c17_i32 dim 1 : vector<3x512xf32>, i32 -> vector<3x512xf32>
    %41 = arith.mulf %40, %39 : vector<3x512xf32>
    %c0_14 = arith.constant 0 : index
    %c0_15 = arith.constant 0 : index
    %42 = vector.load %arg10[%c0_14, %c0_15] : memref<72x512xf32, #tpu.memory_space<vmem>>, vector<3x512xf32>
    tpu.vector_store %arg10[%c0_14, %c0_15], %41 {strides = array<i32>} : memref<72x512xf32, #tpu.memory_space<vmem>>, vector<3x512xf32>,
    %43 = vector.extract_strided_slice %10 {offsets = [0, 0], sizes = [3, 512], strides = [1, 1]} : vector<8x512xf32> to vector<3x512xf32>
    %c16_i32 = arith.constant 16 : i32
    %44 = tpu.dynamic_rotate %1 by %c16_i32 dim 1 : vector<3x512xf32>, i32 -> vector<3x512xf32>
    %45 = arith.mulf %44, %43 : vector<3x512xf32>
    %c8 = arith.constant 8 : index
    %c0_16 = arith.constant 0 : index
    %46 = vector.load %arg10[%c8, %c0_16] : memref<72x512xf32, #tpu.memory_space<vmem>>, vector<3x512xf32>
    tpu.vector_store %arg10[%c8, %c0_16], %45 {strides = array<i32>} : memref<72x512xf32, #tpu.memory_space<vmem>>, vector<3x512xf32>,
    %47 = vector.extract_strided_slice %13 {offsets = [0, 0], sizes = [3, 512], strides = [1, 1]} : vector<8x512xf32> to vector<3x512xf32>
    %c15_i32 = arith.constant 15 : i32
    %48 = tpu.dynamic_rotate %1 by %c15_i32 dim 1 : vector<3x512xf32>, i32 -> vector<3x512xf32>
    %49 = arith.mulf %48, %47 : vector<3x512xf32>
    %c16 = arith.constant 16 : index
    %c0_17 = arith.constant 0 : index
    %50 = vector.load %arg10[%c16, %c0_17] : memref<72x512xf32, #tpu.memory_space<vmem>>, vector<3x512xf32>
    tpu.vector_store %arg10[%c16, %c0_17], %49 {strides = array<i32>} : memref<72x512xf32, #tpu.memory_space<vmem>>, vector<3x512xf32>,
    %51 = vector.extract_strided_slice %16 {offsets = [0, 0], sizes = [3, 512], strides = [1, 1]} : vector<8x512xf32> to vector<3x512xf32>
    %c1_i32 = arith.constant 1 : i32
    %52 = tpu.dynamic_rotate %1 by %c1_i32 dim 1 : vector<3x512xf32>, i32 -> vector<3x512xf32>
    %53 = arith.mulf %52, %51 : vector<3x512xf32>
    %c24 = arith.constant 24 : index
    %c0_18 = arith.constant 0 : index
    %54 = vector.load %arg10[%c24, %c0_18] : memref<72x512xf32, #tpu.memory_space<vmem>>, vector<3x512xf32>
    tpu.vector_store %arg10[%c24, %c0_18], %53 {strides = array<i32>} : memref<72x512xf32, #tpu.memory_space<vmem>>, vector<3x512xf32>,
    %c32 = arith.constant 32 : index
    %c0_19 = arith.constant 0 : index
    %55 = vector.load %arg10[%c32, %c0_19] : memref<72x512xf32, #tpu.memory_space<vmem>>, vector<3x512xf32>
    tpu.vector_store %arg10[%c32, %c0_19], %1 {strides = array<i32>} : memref<72x512xf32, #tpu.memory_space<vmem>>, vector<3x512xf32>,
    %56 = vector.extract_strided_slice %19 {offsets = [0, 0], sizes = [3, 512], strides = [1, 1]} : vector<8x512xf32> to vector<3x512xf32>
    %c511_i32 = arith.constant 511 : i32
    %57 = tpu.dynamic_rotate %1 by %c511_i32 dim 1 : vector<3x512xf32>, i32 -> vector<3x512xf32>
    %58 = arith.mulf %57, %56 : vector<3x512xf32>
    %c40 = arith.constant 40 : index
    %c0_20 = arith.constant 0 : index
    %59 = vector.load %arg10[%c40, %c0_20] : memref<72x512xf32, #tpu.memory_space<vmem>>, vector<3x512xf32>
    tpu.vector_store %arg10[%c40, %c0_20], %58 {strides = array<i32>} : memref<72x512xf32, #tpu.memory_space<vmem>>, vector<3x512xf32>,
    %60 = vector.extract_strided_slice %22 {offsets = [0, 0], sizes = [3, 512], strides = [1, 1]} : vector<8x512xf32> to vector<3x512xf32>
    %c497_i32 = arith.constant 497 : i32
    %61 = tpu.dynamic_rotate %1 by %c497_i32 dim 1 : vector<3x512xf32>, i32 -> vector<3x512xf32>
    %62 = arith.mulf %61, %60 : vector<3x512xf32>
    %c48 = arith.constant 48 : index
    %c0_21 = arith.constant 0 : index
    %63 = vector.load %arg10[%c48, %c0_21] : memref<72x512xf32, #tpu.memory_space<vmem>>, vector<3x512xf32>
    tpu.vector_store %arg10[%c48, %c0_21], %62 {strides = array<i32>} : memref<72x512xf32, #tpu.memory_space<vmem>>, vector<3x512xf32>,
    %64 = vector.extract_strided_slice %25 {offsets = [0, 0], sizes = [3, 512], strides = [1, 1]} : vector<8x512xf32> to vector<3x512xf32>
    %c496_i32 = arith.constant 496 : i32
    %65 = tpu.dynamic_rotate %1 by %c496_i32 dim 1 : vector<3x512xf32>, i32 -> vector<3x512xf32>
    %66 = arith.mulf %65, %64 : vector<3x512xf32>
    %c56 = arith.constant 56 : index
    %c0_22 = arith.constant 0 : index
    %67 = vector.load %arg10[%c56, %c0_22] : memref<72x512xf32, #tpu.memory_space<vmem>>, vector<3x512xf32>
    tpu.vector_store %arg10[%c56, %c0_22], %66 {strides = array<i32>} : memref<72x512xf32, #tpu.memory_space<vmem>>, vector<3x512xf32>,
    %68 = vector.extract_strided_slice %28 {offsets = [0, 0], sizes = [3, 512], strides = [1, 1]} : vector<8x512xf32> to vector<3x512xf32>
    %c495_i32 = arith.constant 495 : i32
    %69 = tpu.dynamic_rotate %1 by %c495_i32 dim 1 : vector<3x512xf32>, i32 -> vector<3x512xf32>
    %70 = arith.mulf %69, %68 : vector<3x512xf32>
    %c64 = arith.constant 64 : index
    %c0_23 = arith.constant 0 : index
    %71 = vector.load %arg10[%c64, %c0_23] : memref<72x512xf32, #tpu.memory_space<vmem>>, vector<3x512xf32>
    tpu.vector_store %arg10[%c64, %c0_23], %70 {strides = array<i32>} : memref<72x512xf32, #tpu.memory_space<vmem>>, vector<3x512xf32>,
    %c0_24 = arith.constant 0 : index
    %c0_25 = arith.constant 0 : index
    %72 = vector.load %arg10[%c0_24, %c0_25] : memref<72x512xf32, #tpu.memory_space<vmem>>, vector<72x512xf32>
    %cst_26 = arith.constant dense<0.000000e+00> : vector<8x512xf32>
    %73 = tpu.matmul %38, %72, %cst_26 {dimension_numbers = #tpu.dot_dimension_numbers<[1], [0], [0], [1], [0, 0, 1, 1], [], []>} : vector<8x72xf32>, vector<72x512xf32>, vector<8x512xf32> -> vector<8x512xf32>
    %74 = arith.addf %73, %31 : vector<8x512xf32>
    %cst_27 = arith.constant 0.000000e+00 : f32
    %75 = vector.broadcast %cst_27 : f32 to vector<8x512xf32>
    %76 = arith.maximumf %74, %75 : vector<8x512xf32>
    %c0_28 = arith.constant 0 : index
    %c0_29 = arith.constant 0 : index
    %77 = vector.load %arg5[%c0_28, %c0_29] : memref<8x72xf32, #tpu.memory_space<vmem>>, vector<8x72xf32>
    %c0_i32 = arith.constant 0 : i32
    %c17_i32_30 = arith.constant 17 : i32
    %78 = tpu.dynamic_rotate %76 by %c17_i32_30 dim 1 : vector<8x512xf32>, i32 -> vector<8x512xf32>
    %79 = arith.mulf %78, %7 : vector<8x512xf32>
    %c0_31 = arith.constant 0 : index
    %c0_32 = arith.constant 0 : index
    %80 = vector.load %arg10[%c0_31, %c0_32] : memref<72x512xf32, #tpu.memory_space<vmem>>, vector<8x512xf32>
    tpu.vector_store %arg10[%c0_31, %c0_32], %79 {strides = array<i32>} : memref<72x512xf32, #tpu.memory_space<vmem>>, vector<8x512xf32>,
    %c16_i32_33 = arith.constant 16 : i32
    %81 = tpu.dynamic_rotate %76 by %c16_i32_33 dim 1 : vector<8x512xf32>, i32 -> vector<8x512xf32>
    %82 = arith.mulf %81, %10 : vector<8x512xf32>
    %c8_34 = arith.constant 8 : index
    %c0_35 = arith.constant 0 : index
    %83 = vector.load %arg10[%c8_34, %c0_35] : memref<72x512xf32, #tpu.memory_space<vmem>>, vector<8x512xf32>
    tpu.vector_store %arg10[%c8_34, %c0_35], %82 {strides = array<i32>} : memref<72x512xf32, #tpu.memory_space<vmem>>, vector<8x512xf32>,
    %c15_i32_36 = arith.constant 15 : i32
    %84 = tpu.dynamic_rotate %76 by %c15_i32_36 dim 1 : vector<8x512xf32>, i32 -> vector<8x512xf32>
    %85 = arith.mulf %84, %13 : vector<8x512xf32>
    %c16_37 = arith.constant 16 : index
    %c0_38 = arith.constant 0 : index
    %86 = vector.load %arg10[%c16_37, %c0_38] : memref<72x512xf32, #tpu.memory_space<vmem>>, vector<8x512xf32>
    tpu.vector_store %arg10[%c16_37, %c0_38], %85 {strides = array<i32>} : memref<72x512xf32, #tpu.memory_space<vmem>>, vector<8x512xf32>,
    %c1_i32_39 = arith.constant 1 : i32
    %87 = tpu.dynamic_rotate %76 by %c1_i32_39 dim 1 : vector<8x512xf32>, i32 -> vector<8x512xf32>
    %88 = arith.mulf %87, %16 : vector<8x512xf32>
    %c24_40 = arith.constant 24 : index
    %c0_41 = arith.constant 0 : index
    %89 = vector.load %arg10[%c24_40, %c0_41] : memref<72x512xf32, #tpu.memory_space<vmem>>, vector<8x512xf32>
    tpu.vector_store %arg10[%c24_40, %c0_41], %88 {strides = array<i32>} : memref<72x512xf32, #tpu.memory_space<vmem>>, vector<8x512xf32>,
    %c32_42 = arith.constant 32 : index
    %c0_43 = arith.constant 0 : index
    %90 = vector.load %arg10[%c32_42, %c0_43] : memref<72x512xf32, #tpu.memory_space<vmem>>, vector<8x512xf32>
    tpu.vector_store %arg10[%c32_42, %c0_43], %76 {strides = array<i32>} : memref<72x512xf32, #tpu.memory_space<vmem>>, vector<8x512xf32>,
    %c511_i32_44 = arith.constant 511 : i32
    %91 = tpu.dynamic_rotate %76 by %c511_i32_44 dim 1 : vector<8x512xf32>, i32 -> vector<8x512xf32>
    %92 = arith.mulf %91, %19 : vector<8x512xf32>
    %c40_45 = arith.constant 40 : index
    %c0_46 = arith.constant 0 : index
    %93 = vector.load %arg10[%c40_45, %c0_46] : memref<72x512xf32, #tpu.memory_space<vmem>>, vector<8x512xf32>
    tpu.vector_store %arg10[%c40_45, %c0_46], %92 {strides = array<i32>} : memref<72x512xf32, #tpu.memory_space<vmem>>, vector<8x512xf32>,
    %c497_i32_47 = arith.constant 497 : i32
    %94 = tpu.dynamic_rotate %76 by %c497_i32_47 dim 1 : vector<8x512xf32>, i32 -> vector<8x512xf32>
    %95 = arith.mulf %94, %22 : vector<8x512xf32>
    %c48_48 = arith.constant 48 : index
    %c0_49 = arith.constant 0 : index
    %96 = vector.load %arg10[%c48_48, %c0_49] : memref<72x512xf32, #tpu.memory_space<vmem>>, vector<8x512xf32>
    tpu.vector_store %arg10[%c48_48, %c0_49], %95 {strides = array<i32>} : memref<72x512xf32, #tpu.memory_space<vmem>>, vector<8x512xf32>,
    %c496_i32_50 = arith.constant 496 : i32
    %97 = tpu.dynamic_rotate %76 by %c496_i32_50 dim 1 : vector<8x512xf32>, i32 -> vector<8x512xf32>
    %98 = arith.mulf %97, %25 : vector<8x512xf32>
    %c56_51 = arith.constant 56 : index
    %c0_52 = arith.constant 0 : index
    %99 = vector.load %arg10[%c56_51, %c0_52] : memref<72x512xf32, #tpu.memory_space<vmem>>, vector<8x512xf32>
    tpu.vector_store %arg10[%c56_51, %c0_52], %98 {strides = array<i32>} : memref<72x512xf32, #tpu.memory_space<vmem>>, vector<8x512xf32>,
    %c495_i32_53 = arith.constant 495 : i32
    %100 = tpu.dynamic_rotate %76 by %c495_i32_53 dim 1 : vector<8x512xf32>, i32 -> vector<8x512xf32>
    %101 = arith.mulf %100, %28 : vector<8x512xf32>
    %c64_54 = arith.constant 64 : index
    %c0_55 = arith.constant 0 : index
    %102 = vector.load %arg10[%c64_54, %c0_55] : memref<72x512xf32, #tpu.memory_space<vmem>>, vector<8x512xf32>
    tpu.vector_store %arg10[%c64_54, %c0_55], %101 {strides = array<i32>} : memref<72x512xf32, #tpu.memory_space<vmem>>, vector<8x512xf32>,
    %c0_56 = arith.constant 0 : index
    %c0_57 = arith.constant 0 : index
    %103 = vector.load %arg10[%c0_56, %c0_57] : memref<72x512xf32, #tpu.memory_space<vmem>>, vector<72x512xf32>
    %cst_58 = arith.constant dense<0.000000e+00> : vector<8x512xf32>
    %104 = tpu.matmul %77, %103, %cst_58 {dimension_numbers = #tpu.dot_dimension_numbers<[1], [0], [0], [1], [0, 0, 1, 1], [], []>} : vector<8x72xf32>, vector<72x512xf32>, vector<8x512xf32> -> vector<8x512xf32>
    %105 = arith.addf %104, %34 : vector<8x512xf32>
    %cst_59 = arith.constant 0.000000e+00 : f32
    %106 = vector.broadcast %cst_59 : f32 to vector<8x512xf32>
    %107 = arith.maximumf %105, %106 : vector<8x512xf32>
    %108 = arith.addf %76, %107 : vector<8x512xf32>
    %c1_i32_60 = arith.constant 1 : i32
    %c17_i32_61 = arith.constant 17 : i32
    %109 = tpu.dynamic_rotate %108 by %c17_i32_61 dim 1 : vector<8x512xf32>, i32 -> vector<8x512xf32>
    %110 = arith.mulf %109, %7 : vector<8x512xf32>
    %c0_62 = arith.constant 0 : index
    %c0_63 = arith.constant 0 : index
    %111 = vector.load %arg10[%c0_62, %c0_63] : memref<72x512xf32, #tpu.memory_space<vmem>>, vector<8x512xf32>
    tpu.vector_store %arg10[%c0_62, %c0_63], %110 {strides = array<i32>} : memref<72x512xf32, #tpu.memory_space<vmem>>, vector<8x512xf32>,
    %c16_i32_64 = arith.constant 16 : i32
    %112 = tpu.dynamic_rotate %108 by %c16_i32_64 dim 1 : vector<8x512xf32>, i32 -> vector<8x512xf32>
    %113 = arith.mulf %112, %10 : vector<8x512xf32>
    %c8_65 = arith.constant 8 : index
    %c0_66 = arith.constant 0 : index
    %114 = vector.load %arg10[%c8_65, %c0_66] : memref<72x512xf32, #tpu.memory_space<vmem>>, vector<8x512xf32>
    tpu.vector_store %arg10[%c8_65, %c0_66], %113 {strides = array<i32>} : memref<72x512xf32, #tpu.memory_space<vmem>>, vector<8x512xf32>,
    %c15_i32_67 = arith.constant 15 : i32
    %115 = tpu.dynamic_rotate %108 by %c15_i32_67 dim 1 : vector<8x512xf32>, i32 -> vector<8x512xf32>
    %116 = arith.mulf %115, %13 : vector<8x512xf32>
    %c16_68 = arith.constant 16 : index
    %c0_69 = arith.constant 0 : index
    %117 = vector.load %arg10[%c16_68, %c0_69] : memref<72x512xf32, #tpu.memory_space<vmem>>, vector<8x512xf32>
    tpu.vector_store %arg10[%c16_68, %c0_69], %116 {strides = array<i32>} : memref<72x512xf32, #tpu.memory_space<vmem>>, vector<8x512xf32>,
    %c1_i32_70 = arith.constant 1 : i32
    %118 = tpu.dynamic_rotate %108 by %c1_i32_70 dim 1 : vector<8x512xf32>, i32 -> vector<8x512xf32>
    %119 = arith.mulf %118, %16 : vector<8x512xf32>
    %c24_71 = arith.constant 24 : index
    %c0_72 = arith.constant 0 : index
    %120 = vector.load %arg10[%c24_71, %c0_72] : memref<72x512xf32, #tpu.memory_space<vmem>>, vector<8x512xf32>
    tpu.vector_store %arg10[%c24_71, %c0_72], %119 {strides = array<i32>} : memref<72x512xf32, #tpu.memory_space<vmem>>, vector<8x512xf32>,
    %c32_73 = arith.constant 32 : index
    %c0_74 = arith.constant 0 : index
    %121 = vector.load %arg10[%c32_73, %c0_74] : memref<72x512xf32, #tpu.memory_space<vmem>>, vector<8x512xf32>
    tpu.vector_store %arg10[%c32_73, %c0_74], %108 {strides = array<i32>} : memref<72x512xf32, #tpu.memory_space<vmem>>, vector<8x512xf32>,
    %c511_i32_75 = arith.constant 511 : i32
    %122 = tpu.dynamic_rotate %108 by %c511_i32_75 dim 1 : vector<8x512xf32>, i32 -> vector<8x512xf32>
    %123 = arith.mulf %122, %19 : vector<8x512xf32>
    %c40_76 = arith.constant 40 : index
    %c0_77 = arith.constant 0 : index
    %124 = vector.load %arg10[%c40_76, %c0_77] : memref<72x512xf32, #tpu.memory_space<vmem>>, vector<8x512xf32>
    tpu.vector_store %arg10[%c40_76, %c0_77], %123 {strides = array<i32>} : memref<72x512xf32, #tpu.memory_space<vmem>>, vector<8x512xf32>,
    %c497_i32_78 = arith.constant 497 : i32
    %125 = tpu.dynamic_rotate %108 by %c497_i32_78 dim 1 : vector<8x512xf32>, i32 -> vector<8x512xf32>
    %126 = arith.mulf %125, %22 : vector<8x512xf32>
    %c48_79 = arith.constant 48 : index
    %c0_80 = arith.constant 0 : index
    %127 = vector.load %arg10[%c48_79, %c0_80] : memref<72x512xf32, #tpu.memory_space<vmem>>, vector<8x512xf32>
    tpu.vector_store %arg10[%c48_79, %c0_80], %126 {strides = array<i32>} : memref<72x512xf32, #tpu.memory_space<vmem>>, vector<8x512xf32>,
    %c496_i32_81 = arith.constant 496 : i32
    %128 = tpu.dynamic_rotate %108 by %c496_i32_81 dim 1 : vector<8x512xf32>, i32 -> vector<8x512xf32>
    %129 = arith.mulf %128, %25 : vector<8x512xf32>
    %c56_82 = arith.constant 56 : index
    %c0_83 = arith.constant 0 : index
    %130 = vector.load %arg10[%c56_82, %c0_83] : memref<72x512xf32, #tpu.memory_space<vmem>>, vector<8x512xf32>
    tpu.vector_store %arg10[%c56_82, %c0_83], %129 {strides = array<i32>} : memref<72x512xf32, #tpu.memory_space<vmem>>, vector<8x512xf32>,
    %c495_i32_84 = arith.constant 495 : i32
    %131 = tpu.dynamic_rotate %108 by %c495_i32_84 dim 1 : vector<8x512xf32>, i32 -> vector<8x512xf32>
    %132 = arith.mulf %131, %28 : vector<8x512xf32>
    %c64_85 = arith.constant 64 : index
    %c0_86 = arith.constant 0 : index
    %133 = vector.load %arg10[%c64_85, %c0_86] : memref<72x512xf32, #tpu.memory_space<vmem>>, vector<8x512xf32>
    tpu.vector_store %arg10[%c64_85, %c0_86], %132 {strides = array<i32>} : memref<72x512xf32, #tpu.memory_space<vmem>>, vector<8x512xf32>,
    %c0_87 = arith.constant 0 : index
    %c0_88 = arith.constant 0 : index
    %134 = vector.load %arg10[%c0_87, %c0_88] : memref<72x512xf32, #tpu.memory_space<vmem>>, vector<72x512xf32>
    %cst_89 = arith.constant dense<0.000000e+00> : vector<8x512xf32>
    %135 = tpu.matmul %77, %134, %cst_89 {dimension_numbers = #tpu.dot_dimension_numbers<[1], [0], [0], [1], [0, 0, 1, 1], [], []>} : vector<8x72xf32>, vector<72x512xf32>, vector<8x512xf32> -> vector<8x512xf32>
    %136 = arith.addf %135, %34 : vector<8x512xf32>
    %cst_90 = arith.constant 0.000000e+00 : f32
    %137 = vector.broadcast %cst_90 : f32 to vector<8x512xf32>
    %138 = arith.maximumf %136, %137 : vector<8x512xf32>
    %139 = arith.addf %108, %138 : vector<8x512xf32>
    %c0_91 = arith.constant 0 : index
    %c0_92 = arith.constant 0 : index
    %140 = vector.load %arg7[%c0_91, %c0_92] : memref<3x72xf32, #tpu.memory_space<vmem>>, vector<3x72xf32>
    %c17_i32_93 = arith.constant 17 : i32
    %141 = tpu.dynamic_rotate %139 by %c17_i32_93 dim 1 : vector<8x512xf32>, i32 -> vector<8x512xf32>
    %142 = arith.mulf %141, %7 : vector<8x512xf32>
    %c0_94 = arith.constant 0 : index
    %c0_95 = arith.constant 0 : index
    %143 = vector.load %arg10[%c0_94, %c0_95] : memref<72x512xf32, #tpu.memory_space<vmem>>, vector<8x512xf32>
    tpu.vector_store %arg10[%c0_94, %c0_95], %142 {strides = array<i32>} : memref<72x512xf32, #tpu.memory_space<vmem>>, vector<8x512xf32>,
    %c16_i32_96 = arith.constant 16 : i32
    %144 = tpu.dynamic_rotate %139 by %c16_i32_96 dim 1 : vector<8x512xf32>, i32 -> vector<8x512xf32>
    %145 = arith.mulf %144, %10 : vector<8x512xf32>
    %c8_97 = arith.constant 8 : index
    %c0_98 = arith.constant 0 : index
    %146 = vector.load %arg10[%c8_97, %c0_98] : memref<72x512xf32, #tpu.memory_space<vmem>>, vector<8x512xf32>
    tpu.vector_store %arg10[%c8_97, %c0_98], %145 {strides = array<i32>} : memref<72x512xf32, #tpu.memory_space<vmem>>, vector<8x512xf32>,
    %c15_i32_99 = arith.constant 15 : i32
    %147 = tpu.dynamic_rotate %139 by %c15_i32_99 dim 1 : vector<8x512xf32>, i32 -> vector<8x512xf32>
    %148 = arith.mulf %147, %13 : vector<8x512xf32>
    %c16_100 = arith.constant 16 : index
    %c0_101 = arith.constant 0 : index
    %149 = vector.load %arg10[%c16_100, %c0_101] : memref<72x512xf32, #tpu.memory_space<vmem>>, vector<8x512xf32>
    tpu.vector_store %arg10[%c16_100, %c0_101], %148 {strides = array<i32>} : memref<72x512xf32, #tpu.memory_space<vmem>>, vector<8x512xf32>,
    %c1_i32_102 = arith.constant 1 : i32
    %150 = tpu.dynamic_rotate %139 by %c1_i32_102 dim 1 : vector<8x512xf32>, i32 -> vector<8x512xf32>
    %151 = arith.mulf %150, %16 : vector<8x512xf32>
    %c24_103 = arith.constant 24 : index
    %c0_104 = arith.constant 0 : index
    %152 = vector.load %arg10[%c24_103, %c0_104] : memref<72x512xf32, #tpu.memory_space<vmem>>, vector<8x512xf32>
    tpu.vector_store %arg10[%c24_103, %c0_104], %151 {strides = array<i32>} : memref<72x512xf32, #tpu.memory_space<vmem>>, vector<8x512xf32>,
    %c32_105 = arith.constant 32 : index
    %c0_106 = arith.constant 0 : index
    %153 = vector.load %arg10[%c32_105, %c0_106] : memref<72x512xf32, #tpu.memory_space<vmem>>, vector<8x512xf32>
    tpu.vector_store %arg10[%c32_105, %c0_106], %139 {strides = array<i32>} : memref<72x512xf32, #tpu.memory_space<vmem>>, vector<8x512xf32>,
    %c511_i32_107 = arith.constant 511 : i32
    %154 = tpu.dynamic_rotate %139 by %c511_i32_107 dim 1 : vector<8x512xf32>, i32 -> vector<8x512xf32>
    %155 = arith.mulf %154, %19 : vector<8x512xf32>
    %c40_108 = arith.constant 40 : index
    %c0_109 = arith.constant 0 : index
    %156 = vector.load %arg10[%c40_108, %c0_109] : memref<72x512xf32, #tpu.memory_space<vmem>>, vector<8x512xf32>
    tpu.vector_store %arg10[%c40_108, %c0_109], %155 {strides = array<i32>} : memref<72x512xf32, #tpu.memory_space<vmem>>, vector<8x512xf32>,
    %c497_i32_110 = arith.constant 497 : i32
    %157 = tpu.dynamic_rotate %139 by %c497_i32_110 dim 1 : vector<8x512xf32>, i32 -> vector<8x512xf32>
    %158 = arith.mulf %157, %22 : vector<8x512xf32>
    %c48_111 = arith.constant 48 : index
    %c0_112 = arith.constant 0 : index
    %159 = vector.load %arg10[%c48_111, %c0_112] : memref<72x512xf32, #tpu.memory_space<vmem>>, vector<8x512xf32>
    tpu.vector_store %arg10[%c48_111, %c0_112], %158 {strides = array<i32>} : memref<72x512xf32, #tpu.memory_space<vmem>>, vector<8x512xf32>,
    %c496_i32_113 = arith.constant 496 : i32
    %160 = tpu.dynamic_rotate %139 by %c496_i32_113 dim 1 : vector<8x512xf32>, i32 -> vector<8x512xf32>
    %161 = arith.mulf %160, %25 : vector<8x512xf32>
    %c56_114 = arith.constant 56 : index
    %c0_115 = arith.constant 0 : index
    %162 = vector.load %arg10[%c56_114, %c0_115] : memref<72x512xf32, #tpu.memory_space<vmem>>, vector<8x512xf32>
    tpu.vector_store %arg10[%c56_114, %c0_115], %161 {strides = array<i32>} : memref<72x512xf32, #tpu.memory_space<vmem>>, vector<8x512xf32>,
    %c495_i32_116 = arith.constant 495 : i32
    %163 = tpu.dynamic_rotate %139 by %c495_i32_116 dim 1 : vector<8x512xf32>, i32 -> vector<8x512xf32>
    %164 = arith.mulf %163, %28 : vector<8x512xf32>
    %c64_117 = arith.constant 64 : index
    %c0_118 = arith.constant 0 : index
    %165 = vector.load %arg10[%c64_117, %c0_118] : memref<72x512xf32, #tpu.memory_space<vmem>>, vector<8x512xf32>
    tpu.vector_store %arg10[%c64_117, %c0_118], %164 {strides = array<i32>} : memref<72x512xf32, #tpu.memory_space<vmem>>, vector<8x512xf32>,
    %c0_119 = arith.constant 0 : index
    %c0_120 = arith.constant 0 : index
    %166 = vector.load %arg10[%c0_119, %c0_120] : memref<72x512xf32, #tpu.memory_space<vmem>>, vector<72x512xf32>
    %cst_121 = arith.constant dense<0.000000e+00> : vector<3x512xf32>
    %167 = tpu.matmul %140, %166, %cst_121 {dimension_numbers = #tpu.dot_dimension_numbers<[1], [0], [0], [1], [0, 0, 1, 1], [], []>} : vector<3x72xf32>, vector<72x512xf32>, vector<3x512xf32> -> vector<3x512xf32>
    %168 = arith.addf %167, %37 : vector<3x512xf32>
    %169 = arith.negf %168 : vector<3x512xf32>
    %170 = math.exp %169 : vector<3x512xf32>
    %cst_122 = arith.constant 1.000000e+00 : f32
    %171 = vector.broadcast %cst_122 : f32 to vector<3x512xf32>
    %172 = arith.addf %171, %170 : vector<3x512xf32>
    %173 = arith.divf %171, %172 : vector<3x512xf32>
    %174 = arith.addf %173, %1 : vector<3x512xf32>
    %cst_123 = arith.constant 9.99999974E-5 : f32
    %cst_124 = arith.constant 1.000000e+00 : f32
    %175 = vector.broadcast %cst_123 : f32 to vector<3x512xf32>
    %176 = arith.maximumf %175, %174 : vector<3x512xf32>
    %177 = vector.broadcast %cst_124 : f32 to vector<3x512xf32>
    %178 = arith.minimumf %177, %176 : vector<3x512xf32>
    %c0_125 = arith.constant 0 : index
    %c0_126 = arith.constant 0 : index
    %c0_127 = arith.constant 0 : index
    %179 = vector.load %arg9[%c0_125, %c0_126, %c0_127] : memref<1x3x512xf32, #tpu.memory_space<vmem>>, vector<1x3x512xf32>
    %180 = vector.shape_cast %179 : vector<1x3x512xf32> to vector<3x512xf32>
    %181 = vector.shape_cast %178 : vector<3x512xf32> to vector<1x3x512xf32>
    tpu.vector_store %arg9[%c0_125, %c0_126, %c0_127], %181 {strides = array<i32>} : memref<1x3x512xf32, #tpu.memory_space<vmem>>, vector<1x3x512xf32>,
    return
  }
  func.func @transform_0(%arg0: i32) -> (i32, i32, i32) {
    %c0_i32 = arith.constant 0 : i32
    %c0_i32_0 = arith.constant 0 : i32
    %c0_i32_1 = arith.constant 0 : i32
    return %arg0, %c0_i32, %c0_i32_0 : i32, i32, i32
  }
  func.func @transform_1(%arg0: i32) -> (i32, i32) {
    %c0_i32 = arith.constant 0 : i32
    %c0_i32_0 = arith.constant 0 : i32
    %c0_i32_1 = arith.constant 0 : i32
    return %c0_i32, %c0_i32_0 : i32, i32
  }
  func.func @transform_2(%arg0: i32) -> (i32, i32) {
    %c0_i32 = arith.constant 0 : i32
    %c0_i32_0 = arith.constant 0 : i32
    %c0_i32_1 = arith.constant 0 : i32
    return %c0_i32, %c0_i32_0 : i32, i32
  }
  func.func @transform_3(%arg0: i32) -> (i32, i32) {
    %c0_i32 = arith.constant 0 : i32
    %c0_i32_0 = arith.constant 0 : i32
    %c0_i32_1 = arith.constant 0 : i32
    return %c0_i32, %c0_i32_0 : i32, i32
  }
  func.func @transform_4(%arg0: i32) -> (i32, i32) {
    %c0_i32 = arith.constant 0 : i32
    %c0_i32_0 = arith.constant 0 : i32
    %c0_i32_1 = arith.constant 0 : i32
    return %c0_i32, %c0_i32_0 : i32, i32
  }
  func.func @transform_5(%arg0: i32) -> (i32, i32) {
    %c0_i32 = arith.constant 0 : i32
    %c0_i32_0 = arith.constant 0 : i32
    %c0_i32_1 = arith.constant 0 : i32
    return %c0_i32, %c0_i32_0 : i32, i32
  }
  func.func @transform_6(%arg0: i32) -> (i32, i32) {
    %c0_i32 = arith.constant 0 : i32
    %c0_i32_0 = arith.constant 0 : i32
    %c0_i32_1 = arith.constant 0 : i32
    return %c0_i32, %c0_i32_0 : i32, i32
  }
  func.func @transform_7(%arg0: i32) -> (i32, i32) {
    %c0_i32 = arith.constant 0 : i32
    %c0_i32_0 = arith.constant 0 : i32
    %c0_i32_1 = arith.constant 0 : i32
    return %c0_i32, %c0_i32_0 : i32, i32
  }
  func.func @transform_8(%arg0: i32) -> (i32, i32, i32) {
    %c0_i32 = arith.constant 0 : i32
    %c0_i32_0 = arith.constant 0 : i32
    %c0_i32_1 = arith.constant 0 : i32
    return %arg0, %c0_i32, %c0_i32_0 : i32, i32, i32
  }
}

</mosaic_0001>

<bundles_post_ra>
// kernel: embed_forward.1
= control target key start
LH: loop header
LB: loop body
LE: loop exit
PB: predicated region body
PF: predicated region fallthrough
CT: control target
= control target key end

     0   :  { %v2887_v2 = vmov 0.0   ;;  %s1868_s9 = smov 16   ;;  %s1869_s10 = smov 15   ;;  %v1875_v5 = vmov 0   ;;  %v75_v7 = vlaneseq  ;;  %vm438_vm8 = vcmask 588800   ;;  %s2878_s0 = inlined_call_operand.vmem [shape: f32[1,3,512], index: 0, kind: input, shape index: {}]   ;;  %s2879_s3 = inlined_call_operand.vmem [shape: f32[8,1], index: 3, kind: input, shape index: {}]   ;;  %s2880_s1 = inlined_call_operand.vmem [shape: f32[9,512], index: 1, kind: input, shape index: {}]   ;;  %s2881_s2 = inlined_call_operand.vmem [shape: f32[8,72], index: 2, kind: input, shape index: {}]   ;;  %s2882_s5 = inlined_call_operand.vmem [shape: f32[8,1], index: 5, kind: input, shape index: {}]   ;;  %s2883_s4 = inlined_call_operand.vmem [shape: f32[8,72], index: 4, kind: input, shape index: {}]   ;;  %s2884_s7 = inlined_call_operand.vmem [shape: f32[3,1], index: 7, kind: input, shape index: {}]   ;;  %s2885_s6 = inlined_call_operand.vmem [shape: f32[3,72], index: 6, kind: input, shape index: {}]   ;;  %s2886_s8 = inlined_call_operand.vmem [shape: f32[1,3,512], index: 8, kind: output, shape index: {}]  }
   0x1   :  { %v1924_v0 = vld [vmem:[%s2878_s0 + $0x8] sm:$0x77]  ;;  %v1929_v1 = vld [vmem:[%s2878_s0] sm:$0x77]  ;;  %31 = vst [vmem:[#allocation2] sm:$0xff] %v2887_v2  ;;  %34 = vst [vmem:[#allocation2 + $0x18] sm:$0xff] %v2887_v2  ;;  %506 = vmatprep.mubr.f32.mxu0 %v2887_v2  ;;  %577 = vmatprep.mubr.f32.mxu1 %v2887_v2 }
   0x2   :  { %32 = vst [vmem:[#allocation2 + $0x8] sm:$0xff] %v2887_v2  ;;  %33 = vst [vmem:[#allocation2 + $0x10] sm:$0xff] %v2887_v2  ;;  %s1867_s0 = smov 17   ;;  %v1975_v3 = vcombine.high %v1924_v0, %v1924_v0  ;;  %v1979_v4 = vcombine.high %v1929_v1, %v1929_v1  ;;  %s1870_s11 = smov 1   ;;  %1842 = vset.pattern.permute.xlu0 %v1875_v5  ;;  %v203_v6 = vld [vmem:[%s2879_s3] sm:$0xff]  ;;  %1843 = vset.pattern.permute.xlu1 %v1875_v5  ;;  %v2048_v8 = vshrl.u32 %v75_v7, 7 }
   0x3   :  { %35 = vst [vmem:[#allocation2 + $0x20] sm:$0xff] %v2887_v2  ;;  %36 = vst [vmem:[#allocation2 + $0x28] sm:$0xff] %v2887_v2  ;;  %232 = vrot.lane.b32.xlu1 %v1924_v0, %s1867_s0  ;;  %228 = vrot.lane.b32.xlu0 %v1929_v1, %s1867_s0  ;;  %s1871_s12 = smov 127   ;;  %s1872_s13 = smov 113   ;;  %v2050_v9 = vand.u32 127, %v75_v7  ;;  %v2055_v10 = vld [vmem:[%s2880_s1] sm:$0xff] }
   0x4   :  { %37 = vst [vmem:[#allocation2 + $0x30] sm:$0xff] %v2887_v2  ;;  %38 = vst [vmem:[#allocation2 + $0x38] sm:$0xff] %v2887_v2  ;;  %s1873_s14 = smov 112   ;;  %s1874_s15 = smov 111   ;;  %v77_v11 = vsub.s32 0, %v2048_v8  ;;  %v2061_v12 = vld [vmem:[%s2880_s1 + $0x18] sm:$0xff] }
   0x5   :  { %39 = vst [vmem:[#allocation2 + $0x40] sm:$0xff] %v2887_v2  ;;  %40 = vst [vmem:[#allocation2 + $0x48] sm:$0xff] %v2887_v2  ;;  %v2066_v13 = vld [vmem:[%s2880_s1 + $0x8] sm:$0xff]  ;;  %v2071_v14 = vld [vmem:[%s2880_s1 + $0x10] sm:$0xff]  ;;  %v93_v17 = vsub.s32 1, %v2048_v8  ;;  %vm238_vm0 = vcmp.lt.s32.totalorder %v2050_v9, 17 }
   0x6   :  { %41 = vst [vmem:[#allocation2 + $0x50] sm:$0xff] %v2887_v2  ;;  %42 = vst [vmem:[#allocation2 + $0x58] sm:$0xff] %v2887_v2  ;;  %v2076_v18 = vrot.slane %v2055_v10, %v77_v11  ;;  %v2079_v19 = vrot.slane %v2061_v12, %v77_v11  ;;  %v2082_v20 = vrot.slane %v2066_v13, %v77_v11  ;;  %vm259_vm1 = vcmp.lt.s32.totalorder %v2050_v9, 16 }
   0x7   :  { %43 = vst [vmem:[#allocation2 + $0x60] sm:$0xff] %v2887_v2  ;;  %44 = vst [vmem:[#allocation2 + $0x68] sm:$0xff] %v2887_v2  ;;  %234 = vrot.lane.b32.xlu1 %v1975_v3, %s1867_s0  ;;  %230 = vrot.lane.b32.xlu0 %v1979_v4, %s1867_s0  ;;  %v2085_v21 = vrot.slane %v2071_v14, %v77_v11  ;;  %v2088_v24 = vrot.slane %v2066_v13, %v93_v17  ;;  %v109_v36 = vsub.s32 2, %v2048_v8 }
   0x8   :  { %45 = vst [vmem:[#allocation2 + $0x70] sm:$0xff] %v2887_v2  ;;  %46 = vst [vmem:[#allocation2 + $0x78] sm:$0xff] %v2887_v2  ;;  %v2108_v38 = vrot.slane %v2055_v10, %v93_v17  ;;  %v2111_v39 = vrot.slane %v2071_v14, %v93_v17  ;;  %v2114_v40 = vrot.slane %v2061_v12, %v93_v17  ;;  %vm280_vm2 = vcmp.lt.s32.totalorder %v2050_v9, 15 }
   0x9   :  { %47 = vst [vmem:[#allocation2 + $0x80] sm:$0xff] %v2887_v2  ;;  %48 = vst [vmem:[#allocation2 + $0x88] sm:$0xff] %v2887_v2  ;;  %v2127_v49 = vrot.slane %v2066_v13, %v109_v36  ;;  %v125_v53 = vsub.s32 3, %v2048_v8  ;;  %v2134_v55 = vrot.slane %v2055_v10, %v109_v36  ;;  %v2137_v56 = vrot.slane %v2071_v14, %v109_v36 }
   0xa   :  { %49 = vst [vmem:[#allocation2 + $0x90] sm:$0xff] %v2887_v2  ;;  %50 = vst [vmem:[#allocation2 + $0x98] sm:$0xff] %v2887_v2  ;;  %v2140_v57 = vrot.slane %v2061_v12, %v109_v36  ;;  %vm301_vm3 = vcmp.lt.s32.totalorder %v2050_v9, 1  ;;  %vm326_vm4 = vcmp.lt.s32.totalorder %v2050_v9, 127  ;;  %vm347_vm5 = vcmp.lt.s32.totalorder %v2050_v9, 113 }
   0xb   :  { %51 = vst [vmem:[#allocation2 + $0xa0] sm:$0xff] %v2887_v2  ;;  %52 = vst [vmem:[#allocation2 + $0xa8] sm:$0xff] %v2887_v2  ;;  %253 = vrot.lane.b32.xlu1 %v1979_v4, %s1868_s9  ;;  %251 = vrot.lane.b32.xlu0 %v1929_v1, %s1868_s9  ;;  %v2149_v7 = vrot.slane %v2066_v13, %v125_v53  ;;  %v2162_v36 = vrot.slane %v2071_v14, %v125_v53  ;;  %vm368_vm6 = vcmp.lt.s32.totalorder %v2050_v9, 112 }
   0xc   :  { %53 = vst [vmem:[#allocation2 + $0xb0] sm:$0xff] %v2887_v2  ;;  %54 = vst [vmem:[#allocation2 + $0xb8] sm:$0xff] %v2887_v2  ;;  %vm389_vm7 = vcmp.lt.s32.totalorder %v2050_v9, 111 }
   0xd   :  { %55 = vst [vmem:[#allocation2 + $0xc0] sm:$0xff] %v2887_v2  ;;  %56 = vst [vmem:[#allocation2 + $0xc8] sm:$0xff] %v2887_v2 }
   0xe   :  { %57 = vst [vmem:[#allocation2 + $0xd0] sm:$0xff] %v2887_v2  ;;  %58 = vst [vmem:[#allocation2 + $0xd8] sm:$0xff] %v2887_v2 }
   0xf   :  { %59 = vst [vmem:[#allocation2 + $0xe0] sm:$0xff] %v2887_v2  ;;  %60 = vst [vmem:[#allocation2 + $0xe8] sm:$0xff] %v2887_v2  ;;  %257 = vrot.lane.b32.xlu1 %v1975_v3, %s1868_s9  ;;  %255 = vrot.lane.b32.xlu0 %v1924_v0, %s1868_s9 }
  0x10   :  { %61 = vst [vmem:[#allocation2 + $0xf0] sm:$0xff] %v2887_v2  ;;  %62 = vst [vmem:[#allocation2 + $0xf8] sm:$0xff] %v2887_v2 }
  0x11   :  { %63 = vst [vmem:[#allocation2 + $0x100] sm:$0xff] %v2887_v2  ;;  %64 = vst [vmem:[#allocation2 + $0x108] sm:$0xff] %v2887_v2 }
  0x12   :  { %65 = vst [vmem:[#allocation2 + $0x110] sm:$0xff] %v2887_v2  ;;  %66 = vst [vmem:[#allocation2 + $0x118] sm:$0xff] %v2887_v2 }
  0x13   :  { %314 = vst [vmem:[#allocation2 + $0x80] sm:$0x7] %v1929_v1  ;;  %316 = vst [vmem:[#allocation2 + $0x90] sm:$0x7] %v1924_v0  ;;  %274 = vrot.lane.b32.xlu1 %v1979_v4, %s1869_s10  ;;  %272 = vrot.lane.b32.xlu0 %v1929_v1, %s1869_s10 }
  0x14   :  { %315 = vst [vmem:[#allocation2 + $0x88] sm:$0x7] %v1979_v4  ;;  %317 = vst [vmem:[#allocation2 + $0x98] sm:$0x7] %v1975_v3 }
  0x17   :  { %278 = vrot.lane.b32.xlu1 %v1975_v3, %s1869_s10  ;;  %276 = vrot.lane.b32.xlu0 %v1924_v0, %s1869_s10 }
  0x1b   :  { %295 = vrot.lane.b32.xlu1 %v1979_v4, %s1870_s11  ;;  %293 = vrot.lane.b32.xlu0 %v1929_v1, %s1870_s11 }
  0x1f   :  { %299 = vrot.lane.b32.xlu1 %v1975_v3, %s1870_s11  ;;  %297 = vrot.lane.b32.xlu0 %v1924_v0, %s1870_s11 }
  0x23   :  { %320 = vrot.lane.b32.xlu1 %v1979_v4, %s1871_s12  ;;  %318 = vrot.lane.b32.xlu0 %v1929_v1, %s1871_s12 }
  0x27   :  { %324 = vrot.lane.b32.xlu1 %v1975_v3, %s1871_s12  ;;  %322 = vrot.lane.b32.xlu0 %v1924_v0, %s1871_s12 }
  0x2b   :  { %341 = vrot.lane.b32.xlu1 %v1979_v4, %s1872_s13  ;;  %339 = vrot.lane.b32.xlu0 %v1929_v1, %s1872_s13 }
  0x2f   :  { %345 = vrot.lane.b32.xlu1 %v1975_v3, %s1872_s13  ;;  %343 = vrot.lane.b32.xlu0 %v1924_v0, %s1872_s13 }
  0x33   :  { %362 = vrot.lane.b32.xlu1 %v1979_v4, %s1873_s14  ;;  %360 = vrot.lane.b32.xlu0 %v1929_v1, %s1873_s14 }
  0x37   :  { %366 = vrot.lane.b32.xlu1 %v1975_v3, %s1873_s14  ;;  %364 = vrot.lane.b32.xlu0 %v1924_v0, %s1873_s14 }
  0x3b   :  { %383 = vrot.lane.b32.xlu1 %v1979_v4, %s1874_s15  ;;  %381 = vrot.lane.b32.xlu0 %v1929_v1, %s1874_s15 }
  0x3f   :  { %387 = vrot.lane.b32.xlu1 %v1975_v3, %s1874_s15  ;;  %385 = vrot.lane.b32.xlu0 %v1924_v0, %s1874_s15 }
  0x43   :  { %206 = vperm.xlu0 %1842, %v203_v6  }
  0x75   :  { %v233_v15 = vpop.permute.xlu1 %232  ;;  %v229_v16 = vpop.permute.xlu0 %228 }
  0x79   :  { %v235_v22 = vpop.permute.xlu1 %234  ;;  %v231_v23 = vpop.permute.xlu0 %230 }
  0x7a   :  { %v239_v25 = vsel %vm238_vm0, %v233_v15, %v235_v22  ;;  %v242_v26 = vsel %vm238_vm0, %v235_v22, %v229_v16  ;;  %v240_v27 = vsel %vm238_vm0, %v231_v23, %v233_v15  ;;  %v241_v28 = vsel %vm238_vm0, %v229_v16, %v231_v23 }
  0x7b   :  { %v243_v29 = vmul.f32 %v242_v26, %v2076_v18  ;;  %v246_v30 = vmul.f32 %v239_v25, %v2079_v19  ;;  %v244_v31 = vmul.f32 %v241_v28, %v2082_v20  ;;  %v245_v32 = vmul.f32 %v240_v27, %v2085_v21 }
  0x7d   :  { %247 = vst [vmem:[#allocation2] sm:$0x7] %v243_v29  ;;  %250 = vst [vmem:[#allocation2 + $0x18] sm:$0x7] %v246_v30  ;;  %v254_v33 = vpop.permute.xlu1 %253  ;;  %v252_v34 = vpop.permute.xlu0 %251 }
  0x7e   :  { %248 = vst [vmem:[#allocation2 + $0x8] sm:$0x7] %v244_v31  ;;  %249 = vst [vmem:[#allocation2 + $0x10] sm:$0x7] %v245_v32  ;;  %v262_v35 = vsel %vm259_vm1, %v252_v34, %v254_v33 }
  0x7f   :  { %v265_v37 = vmul.f32 %v262_v35, %v2088_v24 }
  0x81   :  { %269 = vst [vmem:[#allocation2 + $0x28] sm:$0x7] %v265_v37  ;;  %v258_v41 = vpop.permute.xlu1 %257  ;;  %v256_v42 = vpop.permute.xlu0 %255  ;;  %v2165_v37 = vrot.slane %v2061_v12, %v125_v53 }
  0x82   :  { %v263_v43 = vsel %vm259_vm1, %v258_v41, %v252_v34  ;;  %v260_v44 = vsel %vm259_vm1, %v256_v42, %v258_v41  ;;  %v261_v45 = vsel %vm259_vm1, %v254_v33, %v256_v42  ;;  %v2158_v34 = vrot.slane %v2055_v10, %v125_v53 }
  0x83   :  { %v264_v46 = vmul.f32 %v263_v43, %v2108_v38  ;;  %v266_v47 = vmul.f32 %v261_v45, %v2111_v39  ;;  %v267_v48 = vmul.f32 %v260_v44, %v2114_v40  ;;  %v141_v41 = vsub.s32 5, %v2048_v8 }
  0x84   :  { %v402_v17 = vld [vmem:[#allocation2] sm:$0xff]  ;;  %v405_v22 = vld [vmem:[#allocation2 + $0x18] sm:$0xff] }
  0x85   :  { %268 = vst [vmem:[#allocation2 + $0x20] sm:$0x7] %v264_v46  ;;  %270 = vst [vmem:[#allocation2 + $0x30] sm:$0x7] %v266_v47  ;;  %v275_v50 = vpop.permute.xlu1 %274  ;;  %v273_v51 = vpop.permute.xlu0 %272  ;;  %v403_v58 = vld [vmem:[#allocation2 + $0x8] sm:$0xff]  ;;  %v404_v23 = vld [vmem:[#allocation2 + $0x10] sm:$0xff] }
  0x86   :  { %271 = vst [vmem:[#allocation2 + $0x38] sm:$0x7] %v267_v48  ;;  %v283_v52 = vsel %vm280_vm2, %v273_v51, %v275_v50 }
  0x87   :  { %v286_v54 = vmul.f32 %v283_v52, %v2127_v49 }
  0x88   :  { %v407_v59 = vld [vmem:[#allocation2 + $0x28] sm:$0xff] }
  0x89   :  { %290 = vst [vmem:[#allocation2 + $0x48] sm:$0x7] %v286_v54  ;;  %v279_v60 = vpop.permute.xlu1 %278  ;;  %v277_v61 = vpop.permute.xlu0 %276  ;;  %v1704_v62 = vpack.c.bf16 %v407_v59, %v403_v58  ;;  %v2184_v58 = vrot.slane %v2061_v12, %v141_v41 }
  0x8a   :  { %v284_v63 = vsel %vm280_vm2, %v279_v60, %v273_v51  ;;  %v281_v5 = vsel %vm280_vm2, %v277_v61, %v279_v60  ;;  %v282_v6 = vsel %vm280_vm2, %v275_v50, %v277_v61  ;;  %v2179_v51 = vrot.slane %v2055_v10, %v141_v41 }
  0x8b   :  { %v285_v11 = vmul.f32 %v284_v63, %v2134_v55  ;;  %v287_v15 = vmul.f32 %v282_v6, %v2137_v56  ;;  %v288_v16 = vmul.f32 %v281_v5, %v2140_v57  ;;  %1705 = vmatprep.subr.bf16.mxu0 %v1704_v62  ;;  %v2188_v60 = vrot.slane %v2066_v13, %v141_v41 }
  0x8c   :  { %v406_v25 = vld [vmem:[#allocation2 + $0x20] sm:$0xff]  ;;  %v408_v27 = vld [vmem:[#allocation2 + $0x30] sm:$0xff]  ;;  %v2191_v61 = vrot.slane %v2071_v14, %v141_v41  ;;  %v157_v62 = vsub.s32 6, %v2048_v8 }
  0x8d   :  { %v409_v26 = vld [vmem:[#allocation2 + $0x38] sm:$0xff]  ;;  %289 = vst [vmem:[#allocation2 + $0x40] sm:$0x7] %v285_v11  ;;  %291 = vst [vmem:[#allocation2 + $0x50] sm:$0x7] %v287_v15  ;;  %v296_v28 = vpop.permute.xlu1 %295  ;;  %v294_v29 = vpop.permute.xlu0 %293  ;;  %v1706_v30 = vpack.c.bf16 %v406_v25, %v402_v17  ;;  %v1722_v32 = vpack.c.bf16 %v408_v27, %v404_v23 }
  0x8e   :  { %292 = vst [vmem:[#allocation2 + $0x58] sm:$0x7] %v288_v16  ;;  %v1720_v31 = vpack.c.bf16 %v409_v26, %v405_v22  ;;  %v304_v33 = vsel %vm301_vm3, %v294_v29, %v296_v28  ;;  %v2205_v27 = vrot.slane %v2055_v10, %v157_v62 }
  0x8f   :  { %v307_v35 = vmul.f32 %v304_v33, %v2149_v7  ;;  %1707 = vmatpush1.bf16.msra.mxu0 %v1706_v30 }
  0x90   :  { %1721 = vmatprep.subr.bf16.mxu1 %v1720_v31  ;;  %v411_v63 = vld [vmem:[#allocation2 + $0x48] sm:$0xff] }
  0x91   :  { %1723 = vmatpush1.bf16.msra.mxu1 %v1722_v32  ;;  %311 = vst [vmem:[#allocation2 + $0x68] sm:$0x7] %v307_v35  ;;  %v300_v42 = vpop.permute.xlu1 %299  ;;  %v298_v43 = vpop.permute.xlu0 %297 }
  0x92   :  { %v305_v44 = vsel %vm301_vm3, %v300_v42, %v294_v29  ;;  %v302_v45 = vsel %vm301_vm3, %v298_v43, %v300_v42  ;;  %v303_v46 = vsel %vm301_vm3, %v296_v28, %v298_v43 }
  0x93   :  { %v306_v47 = vmul.f32 %v305_v44, %v2158_v34  ;;  %v308_v48 = vmul.f32 %v303_v46, %v2162_v36  ;;  %v309_v50 = vmul.f32 %v302_v45, %v2165_v37  ;;  %v2210_v46 = vrot.slane %v2061_v12, %v157_v62 }
  0x94   :  { %v410_v28 = vld [vmem:[#allocation2 + $0x40] sm:$0xff]  ;;  %v412_v30 = vld [vmem:[#allocation2 + $0x50] sm:$0xff] }
  0x95   :  { %310 = vst [vmem:[#allocation2 + $0x60] sm:$0x7] %v306_v47  ;;  %312 = vst [vmem:[#allocation2 + $0x70] sm:$0x7] %v308_v48  ;;  %v321_v52 = vpop.permute.xlu1 %320  ;;  %v319_v53 = vpop.permute.xlu0 %318  ;;  %v413_v29 = vld [vmem:[#allocation2 + $0x58] sm:$0xff]  ;;  %v2214_v48 = vrot.slane %v2066_v13, %v157_v62 }
  0x96   :  { %313 = vst [vmem:[#allocation2 + $0x78] sm:$0x7] %v309_v50  ;;  %v329_v54 = vsel %vm326_vm4, %v319_v53, %v321_v52  ;;  %v2217_v50 = vrot.slane %v2071_v14, %v157_v62  ;;  %v421_v62 = vld [vmem:[#allocation2 + $0x98] sm:$0xff] }
  0x97   :  { %v331_v59 = vmul.f32 %v329_v54, %v2179_v51 }
  0x98   :  { %v415_v5 = vld [vmem:[#allocation2 + $0x68] sm:$0xff] }
  0x99   :  { %335 = vst [vmem:[#allocation2 + $0xa0] sm:$0x7] %v331_v59  ;;  %v325_v6 = vpop.permute.xlu1 %324  ;;  %v323_v11 = vpop.permute.xlu0 %322  ;;  %v1708_v15 = vpack.c.bf16 %v415_v5, %v411_v63 }
  0x9a   :  { %v330_v16 = vsel %vm326_vm4, %v325_v6, %v319_v53  ;;  %v327_v17 = vsel %vm326_vm4, %v323_v11, %v325_v6  ;;  %v328_v22 = vsel %vm326_vm4, %v321_v52, %v323_v11  ;;  %v173_v52 = vsub.s32 7, %v2048_v8  ;;  %v419_v6 = vld [vmem:[#allocation2 + $0x88] sm:$0xff]  ;;  %v420_v11 = vld [vmem:[#allocation2 + $0x90] sm:$0xff] }
  0x9b   :  { %v334_v23 = vmul.f32 %v330_v16, %v2184_v58  ;;  %v332_v25 = vmul.f32 %v328_v22, %v2188_v60  ;;  %v333_v26 = vmul.f32 %v327_v17, %v2191_v61  ;;  %1709 = vmatprep.subr.bf16.mxu0 %v1708_v15  ;;  %v418_v22 = vld [vmem:[#allocation2 + $0x80] sm:$0xff] }
  0x9c   :  { %v414_v31 = vld [vmem:[#allocation2 + $0x60] sm:$0xff]  ;;  %v416_v33 = vld [vmem:[#allocation2 + $0x70] sm:$0xff]  ;;  %v2231_v17 = vrot.slane %v2055_v10, %v173_v52  ;;  %v2236_v10 = vrot.slane %v2061_v12, %v173_v52 }
  0x9d   :  { %v417_v32 = vld [vmem:[#allocation2 + $0x78] sm:$0xff]  ;;  %338 = vst [vmem:[#allocation2 + $0xb8] sm:$0x7] %v334_v23  ;;  %336 = vst [vmem:[#allocation2 + $0xa8] sm:$0x7] %v332_v25  ;;  %v342_v35 = vpop.permute.xlu1 %341  ;;  %v340_v41 = vpop.permute.xlu0 %339  ;;  %v1710_v42 = vpack.c.bf16 %v414_v31, %v410_v28  ;;  %v1726_v44 = vpack.c.bf16 %v416_v33, %v412_v30 }
  0x9e   :  { %337 = vst [vmem:[#allocation2 + $0xb0] sm:$0x7] %v333_v26  ;;  %v1724_v43 = vpack.c.bf16 %v417_v32, %v413_v29  ;;  %v350_v45 = vsel %vm347_vm5, %v340_v41, %v342_v35 }
  0x9f   :  { %v352_v47 = vmul.f32 %v350_v45, %v2205_v27  ;;  %1711 = vmatpush1.bf16.msra.mxu0 %v1710_v42 }
  0xa0   :  { %1725 = vmatprep.subr.bf16.mxu1 %v1724_v43  ;;  %v422_v23 = vld [vmem:[#allocation2 + $0xa0] sm:$0xff]  ;;  %v2240_v43 = vrot.slane %v2066_v13, %v173_v52 }
  0xa1   :  { %1727 = vmatpush1.bf16.msra.mxu1 %v1726_v44  ;;  %356 = vst [vmem:[#allocation2 + $0xc0] sm:$0x7] %v352_v47  ;;  %v346_v53 = vpop.permute.xlu1 %345  ;;  %v344_v54 = vpop.permute.xlu0 %343  ;;  %v2243_v44 = vrot.slane %v2071_v14, %v173_v52  ;;  %v2258_v52 = vld [vmem:[%s2880_s1 + $0x20] ss:$0 sm:$0xff] }
  0xa2   :  { %v351_v59 = vsel %vm347_vm5, %v346_v53, %v340_v41  ;;  %v348_v63 = vsel %vm347_vm5, %v344_v54, %v346_v53  ;;  %v349_v5 = vsel %vm347_vm5, %v342_v35, %v344_v54  ;;  %v1714_v41 = vpack.c.bf16 %v422_v23, %v418_v22 }
  0xa3   :  { %v355_v8 = vmul.f32 %v351_v59, %v2210_v46  ;;  %v353_v15 = vmul.f32 %v349_v5, %v2214_v48  ;;  %v354_v16 = vmul.f32 %v348_v63, %v2217_v50 }
  0xa4   :  { %v423_v25 = vld [vmem:[#allocation2 + $0xa8] sm:$0xff]  ;;  %v425_v26 = vld [vmem:[#allocation2 + $0xb8] sm:$0xff] }
  0xa5   :  { %v424_v28 = vld [vmem:[#allocation2 + $0xb0] sm:$0xff]  ;;  %359 = vst [vmem:[#allocation2 + $0xd8] sm:$0x7] %v355_v8  ;;  %357 = vst [vmem:[#allocation2 + $0xc8] sm:$0x7] %v353_v15  ;;  %v363_v29 = vpop.permute.xlu1 %362  ;;  %v361_v30 = vpop.permute.xlu0 %360  ;;  %v1712_v31 = vpack.c.bf16 %v423_v25, %v419_v6  ;;  %v1728_v32 = vpack.c.bf16 %v425_v26, %v421_v62 }
  0xa6   :  { %358 = vst [vmem:[#allocation2 + $0xd0] sm:$0x7] %v354_v16  ;;  %v1730_v33 = vpack.c.bf16 %v424_v28, %v420_v11  ;;  %v371_v35 = vsel %vm368_vm6, %v361_v30, %v363_v29  ;;  %v2266_v11 = vld [vmem:[%s2880_s1 + $0x38] ss:$0 sm:$0xff]  ;;  %v2271_v8 = vld [vmem:[%s2880_s1 + $0x28] ss:$0 sm:$0xff] }
  0xa7   :  { %v373_v42 = vmul.f32 %v371_v35, %v2231_v17  ;;  %1713 = vmatprep.subr.bf16.mxu0 %v1712_v31  ;;  %1729 = vmatprep.subr.bf16.mxu1 %v1728_v32  ;;  %v2276_v15 = vld [vmem:[%s2880_s1 + $0x30] ss:$0 sm:$0xff] }
  0xa8   :  { %1715 = vmatpush1.bf16.msra.mxu0 %v1714_v41  ;;  %1731 = vmatpush1.bf16.msra.mxu1 %v1730_v33 }
  0xa9   :  { %377 = vst [vmem:[#allocation2 + $0xe0] sm:$0x7] %v373_v42  ;;  %v367_v45 = vpop.permute.xlu1 %366  ;;  %v365_v47 = vpop.permute.xlu0 %364 }
  0xaa   :  { %v372_v53 = vsel %vm368_vm6, %v367_v45, %v361_v30  ;;  %v369_v12 = vsel %vm368_vm6, %v365_v47, %v367_v45  ;;  %v370_v54 = vsel %vm368_vm6, %v363_v29, %v365_v47 }
  0xab   :  { %v376_v13 = vmul.f32 %v372_v53, %v2236_v10  ;;  %v374_v59 = vmul.f32 %v370_v54, %v2240_v43  ;;  %v375_v14 = vmul.f32 %v369_v12, %v2243_v44  ;;  %v426_v12 = vld [vmem:[#allocation2 + $0xc0] sm:$0xff] }
  0xac   :  { %v427_v28 = vld [vmem:[#allocation2 + $0xc8] sm:$0xff]  ;;  %v429_v32 = vld [vmem:[#allocation2 + $0xd8] sm:$0xff] }
  0xad   :  { %380 = vst [vmem:[#allocation2 + $0xf8] sm:$0x7] %v376_v13  ;;  %378 = vst [vmem:[#allocation2 + $0xe8] sm:$0x7] %v374_v59  ;;  %v384_v63 = vpop.permute.xlu1 %383  ;;  %v382_v5 = vpop.permute.xlu0 %381  ;;  %v428_v35 = vld [vmem:[#allocation2 + $0xd0] sm:$0xff]  ;;  %v221_v59 = vld [vmem:[%s2881_s2] sm:$0xff] }
  0xae   :  { %379 = vst [vmem:[#allocation2 + $0xf0] sm:$0x7] %v375_v14  ;;  %v392_v6 = vsel %vm389_vm7, %v382_v5, %v384_v63 }
  0xaf   :  { %v394_v62 = vmul.f32 %v2258_v52, %v392_v6 }
  0xb0   :  { %v430_v33 = vld [vmem:[#allocation2 + $0xe0] sm:$0xff] }
  0xb1   :  { %398 = vst [vmem:[#allocation2 + $0x100] sm:$0x7] %v394_v62  ;;  %v388_v16 = vpop.permute.xlu1 %387  ;;  %v386_v22 = vpop.permute.xlu0 %385  ;;  %v1718_v13 = vpack.c.bf16 %v430_v33, %v426_v12 }
  0xb2   :  { %v393_v23 = vsel %vm389_vm7, %v388_v16, %v382_v5  ;;  %v390_v25 = vsel %vm389_vm7, %v386_v22, %v388_v16  ;;  %v391_v26 = vsel %vm389_vm7, %v384_v63, %v386_v22 }
  0xb3   :  { %v397_v29 = vmul.f32 %v2266_v11, %v393_v23  ;;  %v395_v30 = vmul.f32 %v2271_v8, %v391_v26  ;;  %v396_v31 = vmul.f32 %v2276_v15, %v390_v25 }
  0xb4   :  { %v431_v41 = vld [vmem:[#allocation2 + $0xe8] sm:$0xff]  ;;  %v433_v42 = vld [vmem:[#allocation2 + $0xf8] sm:$0xff] }
  0xb5   :  { %v432_v45 = vld [vmem:[#allocation2 + $0xf0] sm:$0xff]  ;;  %401 = vst [vmem:[#allocation2 + $0x118] sm:$0x7] %v397_v29  ;;  %399 = vst [vmem:[#allocation2 + $0x108] sm:$0x7] %v395_v30  ;;  %v1716_v47 = vpack.c.bf16 %v431_v41, %v427_v28  ;;  %v1732_v53 = vpack.c.bf16 %v433_v42, %v429_v32  ;;  %v209_v41 = vld [vmem:[%s2882_s5] sm:$0xff] }
  0xb6   :  { %400 = vst [vmem:[#allocation2 + $0x110] sm:$0x7] %v396_v31  ;;  %v1734_v54 = vpack.c.bf16 %v432_v45, %v428_v35 }
  0xb7   :  { %1717 = vmatprep.subr.bf16.mxu0 %v1716_v47  ;;  %1733 = vmatprep.subr.bf16.mxu1 %v1732_v53 }
  0xb8   :  { %1719 = vmatpush1.bf16.msra.mxu0 %v1718_v13  ;;  %1735 = vmatpush1.bf16.msra.mxu1 %v1734_v54  ;;  %v434_v6 = vld [vmem:[#allocation2 + $0x100] sm:$0xff] }
  0xbc   :  { %v435_v14 = vld [vmem:[#allocation2 + $0x108] sm:$0xff]  ;;  %v437_v63 = vld [vmem:[#allocation2 + $0x118] sm:$0xff] }
  0xbd   :  { %v436_v5 = vld [vmem:[#allocation2 + $0x110] sm:$0xff]  ;;  %458 = vmatprep.subr.mxu0 %v435_v14  ;;  %529 = vmatprep.subr.mxu1 %v437_v63 }
  0xbe   :  { %459 = vmatpush1.msra.mxu0 %v434_v6  ;;  %530 = vmatpush1.msra.mxu1 %v436_v5 }
  0xbf   :  { %1692 = vmatmul.mubr.msk.f32.vlgmr.msra.gmra.mrb[0].mxu0 %vm438_vm8, %v221_v59  ;;  %1693 = vmatmul.mubr.msk.f32.vlgmr.msra.gmra.mrb[0].mxu1 %vm438_vm8, %v221_v59 }
  0xc0   :  { %856 = vmatprep.mubr.f32.mxu0 %v2887_v2  ;;  %927 = vmatprep.mubr.f32.mxu1 %v2887_v2 }
  0xc2   :  { %v207_v62 = vpop.permute.xlu0 %206 }
 0x192   :  { %v579_v16 = vpop.f32.mrb[0].mxu1  ;;  %v508_v22 = vpop.f32.mrb[0].mxu0 }
 0x193   :  { %v580_v23 = vadd.f32 %v579_v16, %v207_v62  ;;  %v509_v25 = vadd.f32 %v508_v22, %v207_v62  ;;  %v510_v26 = vpop.f32.mrb[1].mxu0  ;;  %v581_v28 = vpop.f32.mrb[1].mxu1 }
 0x194   :  { %v511_v31 = vadd.f32 %v510_v26, %v207_v62  ;;  %v582_v33 = vadd.f32 %v581_v28, %v207_v62 }
 0x195   :  { %v2294_v29 = vmax.f32 %v580_v23, 0.0  ;;  %v2296_v30 = vmax.f32 %v509_v25, 0.0 }
 0x196   :  { %v2302_v32 = vmax.f32 %v511_v31, 0.0  ;;  %v2308_v35 = vmax.f32 %v582_v33, 0.0 }
 0x197   :  { %593 = vrot.lane.b32.xlu0 %v2294_v29, %s1867_s0  ;;  %589 = vrot.lane.b32.xlu1 %v2296_v30, %s1867_s0 }
 0x19b   :  { %609 = vrot.lane.b32.xlu0 %v2296_v30, %s1868_s9  ;;  %591 = vrot.lane.b32.xlu1 %v2302_v32, %s1867_s0 }
 0x19f   :  { %613 = vrot.lane.b32.xlu0 %v2294_v29, %s1868_s9  ;;  %595 = vrot.lane.b32.xlu1 %v2308_v35, %s1867_s0 }
 0x1a3   :  { %629 = vrot.lane.b32.xlu0 %v2296_v30, %s1869_s10  ;;  %611 = vrot.lane.b32.xlu1 %v2302_v32, %s1868_s9 }
 0x1a7   :  { %633 = vrot.lane.b32.xlu0 %v2294_v29, %s1869_s10  ;;  %615 = vrot.lane.b32.xlu1 %v2308_v35, %s1868_s9 }
 0x1ab   :  { %649 = vrot.lane.b32.xlu0 %v2296_v30, %s1870_s11  ;;  %631 = vrot.lane.b32.xlu1 %v2302_v32, %s1869_s10 }
 0x1af   :  { %653 = vrot.lane.b32.xlu0 %v2294_v29, %s1870_s11  ;;  %635 = vrot.lane.b32.xlu1 %v2308_v35, %s1869_s10 }
 0x1b3   :  { %673 = vrot.lane.b32.xlu0 %v2296_v30, %s1871_s12  ;;  %651 = vrot.lane.b32.xlu1 %v2302_v32, %s1870_s11 }
 0x1b7   :  { %677 = vrot.lane.b32.xlu0 %v2294_v29, %s1871_s12  ;;  %655 = vrot.lane.b32.xlu1 %v2308_v35, %s1870_s11 }
 0x1bb   :  { %693 = vrot.lane.b32.xlu0 %v2296_v30, %s1872_s13  ;;  %675 = vrot.lane.b32.xlu1 %v2302_v32, %s1871_s12 }
 0x1bf   :  { %697 = vrot.lane.b32.xlu0 %v2294_v29, %s1872_s13  ;;  %679 = vrot.lane.b32.xlu1 %v2308_v35, %s1871_s12 }
 0x1c3   :  { %713 = vrot.lane.b32.xlu0 %v2296_v30, %s1873_s14  ;;  %695 = vrot.lane.b32.xlu1 %v2302_v32, %s1872_s13 }
 0x1c7   :  { %717 = vrot.lane.b32.xlu0 %v2294_v29, %s1873_s14  ;;  %699 = vrot.lane.b32.xlu1 %v2308_v35, %s1872_s13 }
 0x1cb   :  { %733 = vrot.lane.b32.xlu0 %v2296_v30, %s1874_s15  ;;  %715 = vrot.lane.b32.xlu1 %v2302_v32, %s1873_s14 }
 0x1cf   :  { %737 = vrot.lane.b32.xlu0 %v2294_v29, %s1874_s15  ;;  %719 = vrot.lane.b32.xlu1 %v2308_v35, %s1873_s14 }
 0x1d3   :  { %212 = vperm.xlu0 %1842, %v209_v41   ;;  %735 = vrot.lane.b32.xlu1 %v2302_v32, %s1874_s15 }
 0x1d7   :  { %739 = vrot.lane.b32.xlu1 %v2308_v35, %s1874_s15 }
 0x209   :  { %v594_v42 = vpop.permute.xlu0 %593  ;;  %v590_v45 = vpop.permute.xlu1 %589 }
 0x20d   :  { %v610_v47 = vpop.permute.xlu0 %609  ;;  %v592_v53 = vpop.permute.xlu1 %591 }
 0x20e   :  { %v599_v13 = vsel %vm238_vm0, %v590_v45, %v592_v53  ;;  %v598_v23 = vsel %vm238_vm0, %v592_v53, %v594_v42 }
 0x20f   :  { %v602_v5 = vmul.f32 %v599_v13, %v2082_v20 }
 0x211   :  { %v614_v12 = vpop.permute.xlu0 %613  ;;  %v596_v54 = vpop.permute.xlu1 %595 }
 0x212   :  { %v597_v16 = vsel %vm238_vm0, %v594_v42, %v596_v54  ;;  %v600_v22 = vsel %vm238_vm0, %v596_v54, %v590_v45  ;;  %v603_v42 = vmul.f32 %v598_v23, %v2085_v21 }
 0x213   :  { %v601_v13 = vmul.f32 %v600_v22, %v2076_v18 }
 0x215   :  { %v630_v59 = vpop.permute.xlu0 %629  ;;  %v612_v14 = vpop.permute.xlu1 %611 }
 0x216   :  { %v619_v63 = vsel %vm259_vm1, %v610_v47, %v612_v14  ;;  %v618_v6 = vsel %vm259_vm1, %v612_v14, %v614_v12  ;;  %v604_v14 = vmul.f32 %v597_v16, %v2079_v19 }
 0x217   :  { %v622_v62 = vmul.f32 %v619_v63, %v2088_v24  ;;  %v623_v31 = vmul.f32 %v618_v6, %v2111_v39 }
 0x219   :  { %v634_v25 = vpop.permute.xlu0 %633  ;;  %v616_v26 = vpop.permute.xlu1 %615  ;;  %v1736_v28 = vpack.c.bf16 %v622_v62, %v602_v5  ;;  %v1754_v62 = vpack.c.bf16 %v623_v31, %v603_v42 }
 0x21a   :  { %v617_v33 = vsel %vm259_vm1, %v614_v12, %v616_v26  ;;  %v620_v41 = vsel %vm259_vm1, %v616_v26, %v610_v47 }
 0x21b   :  { %v621_v45 = vmul.f32 %v620_v41, %v2108_v38  ;;  %v624_v54 = vmul.f32 %v617_v33, %v2114_v40  ;;  %1737 = vmatprep.subr.bf16.mxu0 %v1736_v28 }
 0x21d   :  { %v650_v53 = vpop.permute.xlu0 %649  ;;  %v632_v63 = vpop.permute.xlu1 %631  ;;  %v1738_v5 = vpack.c.bf16 %v621_v45, %v601_v13  ;;  %v1752_v6 = vpack.c.bf16 %v624_v54, %v604_v14 }
 0x21e   :  { %v639_v16 = vsel %vm280_vm2, %v630_v59, %v632_v63  ;;  %v638_v14 = vsel %vm280_vm2, %v632_v63, %v634_v25 }
 0x21f   :  { %1739 = vmatpush1.bf16.msra.mxu0 %v1738_v5  ;;  %1753 = vmatprep.subr.bf16.mxu1 %v1752_v6  ;;  %v642_v23 = vmul.f32 %v639_v16, %v2127_v49 }
 0x220   :  { %1755 = vmatpush1.bf16.msra.mxu1 %v1754_v62 }
 0x221   :  { %v654_v47 = vpop.permute.xlu0 %653  ;;  %v636_v12 = vpop.permute.xlu1 %635 }
 0x222   :  { %v637_v41 = vsel %vm280_vm2, %v634_v25, %v636_v12  ;;  %v640_v13 = vsel %vm280_vm2, %v636_v12, %v630_v59  ;;  %v643_v25 = vmul.f32 %v638_v14, %v2137_v56 }
 0x223   :  { %v641_v16 = vmul.f32 %v640_v13, %v2134_v55 }
 0x225   :  { %v674_v22 = vpop.permute.xlu0 %673  ;;  %v652_v26 = vpop.permute.xlu1 %651 }
 0x226   :  { %v659_v28 = vsel %vm301_vm3, %v650_v53, %v652_v26  ;;  %v658_v33 = vsel %vm301_vm3, %v652_v26, %v654_v47  ;;  %v644_v26 = vmul.f32 %v637_v41, %v2140_v57 }
 0x227   :  { %v662_v31 = vmul.f32 %v659_v28, %v2149_v7  ;;  %v663_v5 = vmul.f32 %v658_v33, %v2162_v36 }
 0x229   :  { %v678_v45 = vpop.permute.xlu0 %677  ;;  %v656_v54 = vpop.permute.xlu1 %655  ;;  %v1740_v42 = vpack.c.bf16 %v662_v31, %v642_v23  ;;  %v1758_v31 = vpack.c.bf16 %v663_v5, %v643_v25 }
 0x22a   :  { %v657_v6 = vsel %vm301_vm3, %v654_v47, %v656_v54  ;;  %v660_v62 = vsel %vm301_vm3, %v656_v54, %v650_v53 }
 0x22b   :  { %v661_v59 = vmul.f32 %v660_v62, %v2158_v34  ;;  %v664_v12 = vmul.f32 %v657_v6, %v2165_v37  ;;  %1741 = vmatprep.subr.bf16.mxu0 %v1740_v42 }
 0x22d   :  { %v694_v63 = vpop.permute.xlu0 %693  ;;  %v676_v28 = vpop.permute.xlu1 %675  ;;  %v1742_v23 = vpack.c.bf16 %v661_v59, %v641_v16  ;;  %v1756_v33 = vpack.c.bf16 %v664_v12, %v644_v26 }
 0x22e   :  { %v682_v47 = vsel %vm326_vm4, %v676_v28, %v678_v45  ;;  %v683_v53 = vsel %vm326_vm4, %v674_v22, %v676_v28 }
 0x22f   :  { %v685_v41 = vmul.f32 %v683_v53, %v2179_v51  ;;  %v686_v13 = vmul.f32 %v682_v47, %v2188_v60  ;;  %1743 = vmatpush1.bf16.msra.mxu0 %v1742_v23  ;;  %1757 = vmatprep.subr.bf16.mxu1 %v1756_v33 }
 0x230   :  { %1759 = vmatpush1.bf16.msra.mxu1 %v1758_v31 }
 0x231   :  { %v698_v54 = vpop.permute.xlu0 %697  ;;  %v680_v14 = vpop.permute.xlu1 %679  ;;  %v1744_v42 = vpack.c.bf16 %v686_v13, %v2302_v32  ;;  %v1746_v6 = vpack.c.bf16 %v685_v41, %v2296_v30 }
 0x232   :  { %v681_v62 = vsel %vm326_vm4, %v678_v45, %v680_v14  ;;  %v684_v16 = vsel %vm326_vm4, %v680_v14, %v674_v22 }
 0x233   :  { %v687_v5 = vmul.f32 %v681_v62, %v2191_v61  ;;  %v688_v26 = vmul.f32 %v684_v16, %v2184_v58  ;;  %1745 = vmatprep.subr.bf16.mxu0 %v1744_v42 }
 0x234   :  { %1747 = vmatpush1.bf16.msra.mxu0 %v1746_v6 }
 0x235   :  { %v714_v59 = vpop.permute.xlu0 %713  ;;  %v696_v12 = vpop.permute.xlu1 %695  ;;  %v1760_v25 = vpack.c.bf16 %v688_v26, %v2308_v35  ;;  %v1762_v28 = vpack.c.bf16 %v687_v5, %v2294_v29 }
 0x236   :  { %v702_v45 = vsel %vm347_vm5, %v696_v12, %v698_v54  ;;  %v703_v22 = vsel %vm347_vm5, %v694_v63, %v696_v12 }
 0x237   :  { %1761 = vmatprep.subr.bf16.mxu1 %v1760_v25  ;;  %v705_v41 = vmul.f32 %v703_v22, %v2205_v27  ;;  %v706_v13 = vmul.f32 %v702_v45, %v2214_v48 }
 0x238   :  { %1763 = vmatpush1.bf16.msra.mxu1 %v1762_v28 }
 0x239   :  { %v718_v23 = vpop.permute.xlu0 %717  ;;  %v700_v33 = vpop.permute.xlu1 %699 }
 0x23a   :  { %v701_v62 = vsel %vm347_vm5, %v698_v54, %v700_v33  ;;  %v704_v16 = vsel %vm347_vm5, %v700_v33, %v694_v63 }
 0x23b   :  { %v707_v45 = vmul.f32 %v701_v62, %v2217_v50  ;;  %v708_v22 = vmul.f32 %v704_v16, %v2210_v46 }
 0x23d   :  { %v716_v47 = vpop.permute.xlu1 %715  ;;  %v734_v14 = vpop.permute.xlu0 %733 }
 0x23e   :  { %v722_v53 = vsel %vm368_vm6, %v716_v47, %v718_v23  ;;  %v723_v31 = vsel %vm368_vm6, %v714_v59, %v716_v47 }
 0x23f   :  { %v725_v42 = vmul.f32 %v723_v31, %v2231_v17  ;;  %v726_v6 = vmul.f32 %v722_v53, %v2240_v43 }
 0x241   :  { %v720_v5 = vpop.permute.xlu1 %719  ;;  %v1748_v26 = vpack.c.bf16 %v726_v6, %v706_v13  ;;  %v1750_v12 = vpack.c.bf16 %v725_v42, %v705_v41  ;;  %v738_v63 = vpop.permute.xlu0 %737  ;;  %v2466_v42 = vld [vmem:[%s2883_s4] sm:$0xff] }
 0x242   :  { %v721_v25 = vsel %vm368_vm6, %v718_v23, %v720_v5  ;;  %v724_v28 = vsel %vm368_vm6, %v720_v5, %v714_v59 }
 0x243   :  { %v727_v47 = vmul.f32 %v721_v25, %v2243_v44  ;;  %v728_v54 = vmul.f32 %v724_v28, %v2236_v10  ;;  %1749 = vmatprep.subr.bf16.mxu0 %v1748_v26 }
 0x244   :  { %1751 = vmatpush1.bf16.msra.mxu0 %v1750_v12 }
 0x245   :  { %v736_v33 = vpop.permute.xlu1 %735  ;;  %v1764_v53 = vpack.c.bf16 %v728_v54, %v708_v22  ;;  %v1766_v31 = vpack.c.bf16 %v727_v47, %v707_v45 }
 0x246   :  { %v742_v23 = vsel %vm389_vm7, %v736_v33, %v738_v63  ;;  %v743_v59 = vsel %vm389_vm7, %v734_v14, %v736_v33 }
 0x247   :  { %v745_v41 = vmul.f32 %v2258_v52, %v743_v59  ;;  %v746_v13 = vmul.f32 %v2271_v8, %v742_v23  ;;  %1765 = vmatprep.subr.bf16.mxu1 %v1764_v53 }
 0x248   :  { %1767 = vmatpush1.bf16.msra.mxu1 %v1766_v31 }
 0x249   :  { %v740_v6 = vpop.permute.xlu1 %739  ;;  %808 = vmatprep.subr.mxu0 %v746_v13 }
 0x24a   :  { %v741_v62 = vsel %vm389_vm7, %v738_v63, %v740_v6  ;;  %v744_v16 = vsel %vm389_vm7, %v740_v6, %v734_v14  ;;  %809 = vmatpush1.msra.mxu0 %v745_v41 }
 0x24b   :  { %v747_v5 = vmul.f32 %v2276_v15, %v741_v62  ;;  %v748_v26 = vmul.f32 %v2266_v11, %v744_v16  ;;  %1694 = vmatmul.mubr.msk.f32.vlgmr.msra.gmra.mrb[2].mxu0 %vm438_vm8, %v2466_v42 }
 0x24c   :  { %1206 = vmatprep.mubr.f32.mxu0 %v2887_v2 }
 0x24d   :  { %879 = vmatprep.subr.mxu1 %v748_v26 }
 0x24e   :  { %880 = vmatpush1.msra.mxu1 %v747_v5 }
 0x24f   :  { %1695 = vmatmul.mubr.msk.f32.vlgmr.msra.gmra.mrb[2].mxu1 %vm438_vm8, %v2466_v42 }
 0x250   :  { %1277 = vmatprep.mubr.f32.mxu1 %v2887_v2 }
 0x252   :  { %v2480_v12 = vpop.permute.xlu0 %212 }
 0x31e   :  { %v858_v14 = vpop.f32.mrb[2].mxu0 }
 0x31f   :  { %v859_v25 = vadd.f32 %v858_v14, %v2480_v12  ;;  %v860_v28 = vpop.f32.mrb[3].mxu0 }
 0x320   :  { %v861_v45 = vadd.f32 %v860_v28, %v2480_v12 }
 0x321   :  { %v934_v22 = vmax.f32 %v859_v25, 0.0 }
 0x322   :  { %v935_v47 = vmax.f32 %v861_v45, 0.0  ;;  %v929_v54 = vpop.f32.mrb[2].mxu1 }
 0x323   :  { %v2485_v63 = vadd.f32 %v934_v22, %v2296_v30  ;;  %v930_v33 = vadd.f32 %v929_v54, %v2480_v12  ;;  %v931_v53 = vpop.f32.mrb[3].mxu1 }
 0x324   :  { %v2489_v31 = vadd.f32 %v935_v47, %v2302_v32  ;;  %v932_v23 = vadd.f32 %v931_v53, %v2480_v12 }
 0x325   :  { %v936_v59 = vmax.f32 %v930_v33, 0.0  ;;  %942 = vrot.lane.b32.xlu1 %v2485_v63, %s1867_s0 }
 0x326   :  { %v937_v41 = vmax.f32 %v932_v23, 0.0  ;;  %944 = vrot.lane.b32.xlu0 %v2489_v31, %s1867_s0 }
 0x327   :  { %v2497_v13 = vadd.f32 %v936_v59, %v2294_v29 }
 0x328   :  { %v2500_v30 = vadd.f32 %v937_v41, %v2308_v35 }
 0x329   :  { %946 = vrot.lane.b32.xlu1 %v2497_v13, %s1867_s0 }
 0x32a   :  { %948 = vrot.lane.b32.xlu0 %v2500_v30, %s1867_s0 }
 0x32d   :  { %962 = vrot.lane.b32.xlu1 %v2485_v63, %s1868_s9 }
 0x32e   :  { %964 = vrot.lane.b32.xlu0 %v2489_v31, %s1868_s9 }
 0x331   :  { %966 = vrot.lane.b32.xlu1 %v2497_v13, %s1868_s9 }
 0x332   :  { %968 = vrot.lane.b32.xlu0 %v2500_v30, %s1868_s9 }
 0x335   :  { %982 = vrot.lane.b32.xlu1 %v2485_v63, %s1869_s10 }
 0x336   :  { %984 = vrot.lane.b32.xlu0 %v2489_v31, %s1869_s10 }
 0x339   :  { %986 = vrot.lane.b32.xlu1 %v2497_v13, %s1869_s10 }
 0x33a   :  { %988 = vrot.lane.b32.xlu0 %v2500_v30, %s1869_s10 }
 0x33d   :  { %1002 = vrot.lane.b32.xlu1 %v2485_v63, %s1870_s11 }
 0x33e   :  { %1004 = vrot.lane.b32.xlu0 %v2489_v31, %s1870_s11 }
 0x341   :  { %1006 = vrot.lane.b32.xlu1 %v2497_v13, %s1870_s11 }
 0x342   :  { %1008 = vrot.lane.b32.xlu0 %v2500_v30, %s1870_s11 }
 0x345   :  { %1026 = vrot.lane.b32.xlu1 %v2485_v63, %s1871_s12 }
 0x346   :  { %1028 = vrot.lane.b32.xlu0 %v2489_v31, %s1871_s12 }
 0x349   :  { %1030 = vrot.lane.b32.xlu1 %v2497_v13, %s1871_s12 }
 0x34a   :  { %1032 = vrot.lane.b32.xlu0 %v2500_v30, %s1871_s12 }
 0x34d   :  { %1046 = vrot.lane.b32.xlu1 %v2485_v63, %s1872_s13 }
 0x34e   :  { %1048 = vrot.lane.b32.xlu0 %v2489_v31, %s1872_s13 }
 0x351   :  { %1050 = vrot.lane.b32.xlu1 %v2497_v13, %s1872_s13 }
 0x352   :  { %1052 = vrot.lane.b32.xlu0 %v2500_v30, %s1872_s13 }
 0x355   :  { %1066 = vrot.lane.b32.xlu1 %v2485_v63, %s1873_s14 }
 0x356   :  { %1068 = vrot.lane.b32.xlu0 %v2489_v31, %s1873_s14 }
 0x359   :  { %1070 = vrot.lane.b32.xlu1 %v2497_v13, %s1873_s14 }
 0x35a   :  { %1072 = vrot.lane.b32.xlu0 %v2500_v30, %s1873_s14 }
 0x35d   :  { %1086 = vrot.lane.b32.xlu1 %v2485_v63, %s1874_s15 }
 0x35e   :  { %1088 = vrot.lane.b32.xlu0 %v2489_v31, %s1874_s15 }
 0x361   :  { %1090 = vrot.lane.b32.xlu1 %v2497_v13, %s1874_s15 }
 0x362   :  { %1092 = vrot.lane.b32.xlu0 %v2500_v30, %s1874_s15 }
 0x397   :  { %v943_v29 = vpop.permute.xlu1 %942 }
 0x398   :  { %v945_v32 = vpop.permute.xlu0 %944 }
 0x399   :  { %v952_v62 = vsel %vm238_vm0, %v943_v29, %v945_v32 }
 0x39a   :  { %v955_v14 = vmul.f32 %v952_v62, %v2082_v20 }
 0x39b   :  { %v947_v35 = vpop.permute.xlu1 %946 }
 0x39c   :  { %v949_v6 = vpop.permute.xlu0 %948  ;;  %v951_v47 = vsel %vm238_vm0, %v945_v32, %v947_v35 }
 0x39d   :  { %v950_v28 = vsel %vm238_vm0, %v947_v35, %v949_v6  ;;  %v953_v45 = vsel %vm238_vm0, %v949_v6, %v943_v29  ;;  %v956_v35 = vmul.f32 %v951_v47, %v2085_v21 }
 0x39e   :  { %v954_v62 = vmul.f32 %v953_v45, %v2076_v18  ;;  %v957_v29 = vmul.f32 %v950_v28, %v2079_v19 }
 0x39f   :  { %v963_v16 = vpop.permute.xlu1 %962 }
 0x3a0   :  { %v965_v5 = vpop.permute.xlu0 %964 }
 0x3a1   :  { %v972_v26 = vsel %vm259_vm1, %v963_v16, %v965_v5 }
 0x3a2   :  { %v975_v25 = vmul.f32 %v972_v26, %v2088_v24 }
 0x3a3   :  { %v967_v22 = vpop.permute.xlu1 %966 }
 0x3a4   :  { %v971_v54 = vsel %vm259_vm1, %v965_v5, %v967_v22  ;;  %v969_v33 = vpop.permute.xlu0 %968  ;;  %v1768_v53 = vpack.c.bf16 %v975_v25, %v955_v14 }
 0x3a5   :  { %v976_v23 = vmul.f32 %v971_v54, %v2111_v39  ;;  %v970_v59 = vsel %vm259_vm1, %v967_v22, %v969_v33  ;;  %v973_v41 = vsel %vm259_vm1, %v969_v33, %v963_v16 }
 0x3a6   :  { %v974_v6 = vmul.f32 %v973_v41, %v2108_v38  ;;  %v977_v32 = vmul.f32 %v970_v59, %v2114_v40  ;;  %1769 = vmatprep.subr.bf16.mxu0 %v1768_v53 }
 0x3a7   :  { %v983_v5 = vpop.permute.xlu1 %982  ;;  %v1786_v54 = vpack.c.bf16 %v976_v23, %v956_v35 }
 0x3a8   :  { %v985_v26 = vpop.permute.xlu0 %984  ;;  %v1770_v14 = vpack.c.bf16 %v974_v6, %v954_v62  ;;  %v1784_v25 = vpack.c.bf16 %v977_v32, %v957_v29 }
 0x3a9   :  { %v992_v28 = vsel %vm280_vm2, %v983_v5, %v985_v26 }
 0x3aa   :  { %1771 = vmatpush1.bf16.msra.mxu0 %v1770_v14  ;;  %1785 = vmatprep.subr.bf16.mxu1 %v1784_v25  ;;  %v995_v47 = vmul.f32 %v992_v28, %v2127_v49 }
 0x3ab   :  { %v987_v22 = vpop.permute.xlu1 %986  ;;  %1787 = vmatpush1.bf16.msra.mxu1 %v1786_v54 }
 0x3ac   :  { %v989_v16 = vpop.permute.xlu0 %988  ;;  %v991_v29 = vsel %vm280_vm2, %v985_v26, %v987_v22 }
 0x3ad   :  { %v990_v23 = vsel %vm280_vm2, %v987_v22, %v989_v16  ;;  %v993_v41 = vsel %vm280_vm2, %v989_v16, %v983_v5  ;;  %v996_v22 = vmul.f32 %v991_v29, %v2137_v56 }
 0x3ae   :  { %v994_v28 = vmul.f32 %v993_v41, %v2134_v55  ;;  %v997_v5 = vmul.f32 %v990_v23, %v2140_v57 }
 0x3af   :  { %v1003_v45 = vpop.permute.xlu1 %1002 }
 0x3b0   :  { %v1005_v33 = vpop.permute.xlu0 %1004 }
 0x3b1   :  { %v1012_v53 = vsel %vm301_vm3, %v1003_v45, %v1005_v33 }
 0x3b2   :  { %v1015_v59 = vmul.f32 %v1012_v53, %v2149_v7 }
 0x3b3   :  { %v1007_v62 = vpop.permute.xlu1 %1006 }
 0x3b4   :  { %v1011_v6 = vsel %vm301_vm3, %v1005_v33, %v1007_v62  ;;  %v1009_v32 = vpop.permute.xlu0 %1008  ;;  %v1772_v35 = vpack.c.bf16 %v1015_v59, %v995_v47 }
 0x3b5   :  { %v1016_v14 = vmul.f32 %v1011_v6, %v2162_v36  ;;  %v1010_v25 = vsel %vm301_vm3, %v1007_v62, %v1009_v32  ;;  %v1013_v54 = vsel %vm301_vm3, %v1009_v32, %v1003_v45 }
 0x3b6   :  { %v1014_v16 = vmul.f32 %v1013_v54, %v2158_v34  ;;  %v1017_v26 = vmul.f32 %v1010_v25, %v2165_v37  ;;  %1773 = vmatprep.subr.bf16.mxu0 %v1772_v35 }
 0x3b7   :  { %v1027_v33 = vpop.permute.xlu1 %1026  ;;  %v1790_v6 = vpack.c.bf16 %v1016_v14, %v996_v22 }
 0x3b8   :  { %v1029_v53 = vpop.permute.xlu0 %1028  ;;  %v1774_v47 = vpack.c.bf16 %v1014_v16, %v994_v28  ;;  %v1788_v59 = vpack.c.bf16 %v1017_v26, %v997_v5 }
 0x3b9   :  { %v1036_v62 = vsel %vm326_vm4, %v1027_v33, %v1029_v53 }
 0x3ba   :  { %1775 = vmatpush1.bf16.msra.mxu0 %v1774_v47  ;;  %1789 = vmatprep.subr.bf16.mxu1 %v1788_v59  ;;  %v1038_v23 = vmul.f32 %v1036_v62, %v2179_v51 }
 0x3bb   :  { %v1031_v45 = vpop.permute.xlu1 %1030  ;;  %1791 = vmatpush1.bf16.msra.mxu1 %v1790_v6 }
 0x3bc   :  { %v1035_v41 = vsel %vm326_vm4, %v1029_v53, %v1031_v45  ;;  %v1033_v32 = vpop.permute.xlu0 %1032  ;;  %v1778_v26 = vpack.c.bf16 %v1038_v23, %v2485_v63 }
 0x3bd   :  { %v1039_v29 = vmul.f32 %v1035_v41, %v2188_v60  ;;  %v1034_v35 = vsel %vm326_vm4, %v1031_v45, %v1033_v32  ;;  %v1037_v25 = vsel %vm326_vm4, %v1033_v32, %v1027_v33 }
 0x3be   :  { %v1040_v14 = vmul.f32 %v1034_v35, %v2191_v61  ;;  %v1041_v54 = vmul.f32 %v1037_v25, %v2184_v58 }
 0x3bf   :  { %v1047_v28 = vpop.permute.xlu1 %1046  ;;  %v1776_v5 = vpack.c.bf16 %v1039_v29, %v2489_v31 }
 0x3c0   :  { %v1049_v16 = vpop.permute.xlu0 %1048  ;;  %v1792_v22 = vpack.c.bf16 %v1041_v54, %v2500_v30  ;;  %v1794_v53 = vpack.c.bf16 %v1040_v14, %v2497_v13 }
 0x3c1   :  { %1777 = vmatprep.subr.bf16.mxu0 %v1776_v5  ;;  %v1056_v6 = vsel %vm347_vm5, %v1047_v28, %v1049_v16 }
 0x3c2   :  { %1779 = vmatpush1.bf16.msra.mxu0 %v1778_v26  ;;  %1793 = vmatprep.subr.bf16.mxu1 %v1792_v22  ;;  %v1058_v35 = vmul.f32 %v1056_v6, %v2205_v27 }
 0x3c3   :  { %v1051_v47 = vpop.permute.xlu1 %1050  ;;  %1795 = vmatpush1.bf16.msra.mxu1 %v1794_v53 }
 0x3c4   :  { %v1053_v33 = vpop.permute.xlu0 %1052  ;;  %v1055_v23 = vsel %vm347_vm5, %v1049_v16, %v1051_v47 }
 0x3c5   :  { %v1054_v41 = vsel %vm347_vm5, %v1051_v47, %v1053_v33  ;;  %v1057_v32 = vsel %vm347_vm5, %v1053_v33, %v1047_v28  ;;  %v1059_v5 = vmul.f32 %v1055_v23, %v2214_v48 }
 0x3c6   :  { %v1060_v28 = vmul.f32 %v1054_v41, %v2217_v50  ;;  %v1061_v53 = vmul.f32 %v1057_v32, %v2210_v46 }
 0x3c7   :  { %v1067_v59 = vpop.permute.xlu1 %1066 }
 0x3c8   :  { %v1069_v62 = vpop.permute.xlu0 %1068 }
 0x3c9   :  { %v1076_v45 = vsel %vm368_vm6, %v1067_v59, %v1069_v62 }
 0x3ca   :  { %v1078_v25 = vmul.f32 %v1076_v45, %v2231_v17 }
 0x3cb   :  { %v1071_v29 = vpop.permute.xlu1 %1070 }
 0x3cc   :  { %v1075_v14 = vsel %vm368_vm6, %v1069_v62, %v1071_v29  ;;  %v1073_v54 = vpop.permute.xlu0 %1072  ;;  %v1782_v23 = vpack.c.bf16 %v1078_v25, %v1058_v35 }
 0x3cd   :  { %v1079_v26 = vmul.f32 %v1075_v14, %v2240_v43  ;;  %v1074_v16 = vsel %vm368_vm6, %v1071_v29, %v1073_v54  ;;  %v1077_v22 = vsel %vm368_vm6, %v1073_v54, %v1067_v59 }
 0x3ce   :  { %v1080_v47 = vmul.f32 %v1074_v16, %v2243_v44  ;;  %v1081_v33 = vmul.f32 %v1077_v22, %v2236_v10 }
 0x3cf   :  { %v1087_v62 = vpop.permute.xlu1 %1086  ;;  %v1780_v6 = vpack.c.bf16 %v1079_v26, %v1059_v5 }
 0x3d0   :  { %v1089_v45 = vpop.permute.xlu0 %1088  ;;  %v1796_v2 = vpack.c.bf16 %v1081_v33, %v1061_v53  ;;  %v1798_v14 = vpack.c.bf16 %v1080_v47, %v1060_v28 }
 0x3d1   :  { %1781 = vmatprep.subr.bf16.mxu0 %v1780_v6  ;;  %v1096_v59 = vsel %vm389_vm7, %v1087_v62, %v1089_v45 }
 0x3d2   :  { %1783 = vmatpush1.bf16.msra.mxu0 %v1782_v23  ;;  %1797 = vmatprep.subr.bf16.mxu1 %v1796_v2  ;;  %v1098_v25 = vmul.f32 %v2258_v52, %v1096_v59 }
 0x3d3   :  { %v1091_v29 = vpop.permute.xlu1 %1090  ;;  %1799 = vmatpush1.bf16.msra.mxu1 %v1798_v14 }
 0x3d4   :  { %v1095_v41 = vsel %vm389_vm7, %v1089_v45, %v1091_v29  ;;  %v1093_v32 = vpop.permute.xlu0 %1092 }
 0x3d5   :  { %v1099_v54 = vmul.f32 %v2271_v8, %v1095_v41  ;;  %v1094_v5 = vsel %vm389_vm7, %v1091_v29, %v1093_v32  ;;  %v1097_v35 = vsel %vm389_vm7, %v1093_v32, %v1087_v62  ;;  %v2889_v8 = vmov 0.0  }
 0x3d6   :  { %v1100_v2 = vmul.f32 %v2276_v15, %v1094_v5  ;;  %v1101_v26 = vmul.f32 %v2266_v11, %v1097_v35 }
 0x3d7   :  { %1158 = vmatprep.subr.mxu0 %v1099_v54 }
 0x3d8   :  { %1159 = vmatpush1.msra.mxu0 %v1098_v25  ;;  %1229 = vmatprep.subr.mxu1 %v1101_v26 }
 0x3d9   :  { %1696 = vmatmul.mubr.msk.f32.vlgmr.msra.gmra.mrb[4].mxu0 %vm438_vm8, %v2466_v42  ;;  %1230 = vmatpush1.msra.mxu1 %v1100_v2 }
 0x3da   :  { %1697 = vmatmul.mubr.msk.f32.vlgmr.msra.gmra.mrb[4].mxu1 %vm438_vm8, %v2466_v42  ;;  %1560 = vmatprep.mubr.f32.mxu0 %v2889_v8 }
 0x3db   :  { %1631 = vmatprep.mubr.f32.mxu1 %v2889_v8 }
 0x4ac   :  { %v1208_v16 = vpop.f32.mrb[4].mxu0 }
 0x4ad   :  { %v1209_v52 = vadd.f32 %v1208_v16, %v2480_v12  ;;  %v1210_v15 = vpop.f32.mrb[5].mxu0  ;;  %v1279_v22 = vpop.f32.mrb[4].mxu1 }
 0x4ae   :  { %v1211_v11 = vadd.f32 %v1210_v15, %v2480_v12  ;;  %v1280_v28 = vadd.f32 %v1279_v22, %v2480_v12  ;;  %v1281_v53 = vpop.f32.mrb[5].mxu1 }
 0x4af   :  { %v1284_v47 = vmax.f32 %v1209_v52, 0.0  ;;  %v1282_v33 = vadd.f32 %v1281_v53, %v2480_v12  ;;  %v215_v12 = vld [vmem:[%s2884_s7] sm:$0x7] }
 0x4b0   :  { %v1285_v62 = vmax.f32 %v1211_v11, 0.0  ;;  %v1286_v6 = vmax.f32 %v1280_v28, 0.0 }
 0x4b1   :  { %v2673_v42 = vadd.f32 %v1284_v47, %v2485_v63  ;;  %v1287_v45 = vmax.f32 %v1282_v33, 0.0 }
 0x4b2   :  { %v2676_v23 = vadd.f32 %v1285_v62, %v2489_v31  ;;  %v2679_v14 = vadd.f32 %v1286_v6, %v2497_v13 }
 0x4b3   :  { %1373 = vst [vmem:[#allocation2 + $0x80] sm:$0xff] %v2673_v42  ;;  %v2683_v59 = vadd.f32 %v1287_v45, %v2500_v30  ;;  %1293 = vrot.lane.b32.xlu1 %v2673_v42, %s1867_s0 }
 0x4b4   :  { %1374 = vst [vmem:[#allocation2 + $0x88] sm:$0xff] %v2676_v23  ;;  %1375 = vst [vmem:[#allocation2 + $0x90] sm:$0xff] %v2679_v14  ;;  %1295 = vrot.lane.b32.xlu0 %v2676_v23, %s1867_s0 }
 0x4b5   :  { %1376 = vst [vmem:[#allocation2 + $0x98] sm:$0xff] %v2683_v59 }
 0x4b7   :  { %1297 = vrot.lane.b32.xlu1 %v2679_v14, %s1867_s0 }
 0x4b8   :  { %1299 = vrot.lane.b32.xlu0 %v2683_v59, %s1867_s0 }
 0x4bb   :  { %1313 = vrot.lane.b32.xlu1 %v2673_v42, %s1868_s9 }
 0x4bc   :  { %1315 = vrot.lane.b32.xlu0 %v2676_v23, %s1868_s9 }
 0x4bf   :  { %1317 = vrot.lane.b32.xlu1 %v2679_v14, %s1868_s9 }
 0x4c0   :  { %1319 = vrot.lane.b32.xlu0 %v2683_v59, %s1868_s9 }
 0x4c3   :  { %1333 = vrot.lane.b32.xlu1 %v2673_v42, %s1869_s10 }
 0x4c4   :  { %1335 = vrot.lane.b32.xlu0 %v2676_v23, %s1869_s10 }
 0x4c7   :  { %1337 = vrot.lane.b32.xlu1 %v2679_v14, %s1869_s10 }
 0x4c8   :  { %1339 = vrot.lane.b32.xlu0 %v2683_v59, %s1869_s10 }
 0x4cb   :  { %1353 = vrot.lane.b32.xlu1 %v2673_v42, %s1870_s11 }
 0x4cc   :  { %1355 = vrot.lane.b32.xlu0 %v2676_v23, %s1870_s11 }
 0x4cf   :  { %1357 = vrot.lane.b32.xlu1 %v2679_v14, %s1870_s11 }
 0x4d0   :  { %1359 = vrot.lane.b32.xlu0 %v2683_v59, %s1870_s11 }
 0x4d3   :  { %1377 = vrot.lane.b32.xlu1 %v2673_v42, %s1871_s12 }
 0x4d4   :  { %1379 = vrot.lane.b32.xlu0 %v2676_v23, %s1871_s12 }
 0x4d7   :  { %1381 = vrot.lane.b32.xlu1 %v2679_v14, %s1871_s12 }
 0x4d8   :  { %1383 = vrot.lane.b32.xlu0 %v2683_v59, %s1871_s12 }
 0x4db   :  { %1397 = vrot.lane.b32.xlu1 %v2673_v42, %s1872_s13 }
 0x4dc   :  { %1399 = vrot.lane.b32.xlu0 %v2676_v23, %s1872_s13 }
 0x4df   :  { %1401 = vrot.lane.b32.xlu1 %v2679_v14, %s1872_s13 }
 0x4e0   :  { %1403 = vrot.lane.b32.xlu0 %v2683_v59, %s1872_s13 }
 0x4e3   :  { %1417 = vrot.lane.b32.xlu1 %v2673_v42, %s1873_s14 }
 0x4e4   :  { %1419 = vrot.lane.b32.xlu0 %v2676_v23, %s1873_s14 }
 0x4e7   :  { %1421 = vrot.lane.b32.xlu1 %v2679_v14, %s1873_s14 }
 0x4e8   :  { %1423 = vrot.lane.b32.xlu0 %v2683_v59, %s1873_s14 }
 0x4eb   :  { %1437 = vrot.lane.b32.xlu1 %v2673_v42, %s1874_s15 }
 0x4ec   :  { %1439 = vrot.lane.b32.xlu0 %v2676_v23, %s1874_s15 }
 0x4ef   :  { %1441 = vrot.lane.b32.xlu1 %v2679_v14, %s1874_s15 }
 0x4f0   :  { %1443 = vrot.lane.b32.xlu0 %v2683_v59, %s1874_s15 }
 0x4f3   :  { %218 = vperm.xlu1 %1843, %v215_v12  }
 0x525   :  { %v1294_v63 = vpop.permute.xlu1 %1293 }
 0x526   :  { %v1296_v31 = vpop.permute.xlu0 %1295 }
 0x527   :  { %v1303_v13 = vsel %vm238_vm0, %v1294_v63, %v1296_v31 }
 0x528   :  { %v1306_v30 = vmul.f32 %v1303_v13, %v2082_v20 }
 0x529   :  { %v1298_v29 = vpop.permute.xlu1 %1297 }
 0x52a   :  { %1310 = vst [vmem:[#allocation2 + $0x8] sm:$0xff] %v1306_v30  ;;  %v1302_v41 = vsel %vm238_vm0, %v1296_v31, %v1298_v29  ;;  %v1300_v32 = vpop.permute.xlu0 %1299 }
 0x52b   :  { %v1307_v54 = vmul.f32 %v1302_v41, %v2085_v21  ;;  %v1301_v5 = vsel %vm238_vm0, %v1298_v29, %v1300_v32  ;;  %v1304_v35 = vsel %vm238_vm0, %v1300_v32, %v1294_v63 }
 0x52c   :  { %v1305_v25 = vmul.f32 %v1304_v35, %v2076_v18  ;;  %v1308_v2 = vmul.f32 %v1301_v5, %v2079_v19 }
 0x52d   :  { %1311 = vst [vmem:[#allocation2 + $0x10] sm:$0xff] %v1307_v54  ;;  %v1314_v20 = vpop.permute.xlu1 %1313 }
 0x52e   :  { %1309 = vst [vmem:[#allocation2] sm:$0xff] %v1305_v25  ;;  %1312 = vst [vmem:[#allocation2 + $0x18] sm:$0xff] %v1308_v2  ;;  %v1316_v26 = vpop.permute.xlu0 %1315 }
 0x52f   :  { %v1323_v8 = vsel %vm259_vm1, %v1314_v20, %v1316_v26 }
 0x530   :  { %v1326_v21 = vmul.f32 %v1323_v8, %v2088_v24 }
 0x531   :  { %v1318_v16 = vpop.permute.xlu1 %1317 }
 0x532   :  { %1330 = vst [vmem:[#allocation2 + $0x28] sm:$0xff] %v1326_v21  ;;  %v1322_v52 = vsel %vm259_vm1, %v1316_v26, %v1318_v16  ;;  %v1320_v15 = vpop.permute.xlu0 %1319  ;;  %v1800_v22 = vpack.c.bf16 %v1326_v21, %v1306_v30 }
 0x533   :  { %v1327_v18 = vmul.f32 %v1322_v52, %v2111_v39  ;;  %v1321_v19 = vsel %vm259_vm1, %v1318_v16, %v1320_v15  ;;  %v1324_v11 = vsel %vm259_vm1, %v1320_v15, %v1314_v20 }
 0x534   :  { %v1325_v28 = vmul.f32 %v1324_v11, %v2108_v38  ;;  %v1328_v53 = vmul.f32 %v1321_v19, %v2114_v40  ;;  %1801 = vmatprep.subr.bf16.mxu0 %v1800_v22 }
 0x535   :  { %1331 = vst [vmem:[#allocation2 + $0x30] sm:$0xff] %v1327_v18  ;;  %v1334_v24 = vpop.permute.xlu1 %1333  ;;  %v1818_v6 = vpack.c.bf16 %v1327_v18, %v1307_v54 }
 0x536   :  { %1329 = vst [vmem:[#allocation2 + $0x20] sm:$0xff] %v1325_v28  ;;  %1332 = vst [vmem:[#allocation2 + $0x38] sm:$0xff] %v1328_v53  ;;  %v1336_v47 = vpop.permute.xlu0 %1335  ;;  %v1802_v33 = vpack.c.bf16 %v1325_v28, %v1305_v25  ;;  %v1816_v62 = vpack.c.bf16 %v1328_v53, %v1308_v2 }
 0x537   :  { %v1343_v39 = vsel %vm280_vm2, %v1334_v24, %v1336_v47 }
 0x538   :  { %v1346_v45 = vmul.f32 %v1343_v39, %v2127_v49  ;;  %1803 = vmatpush1.bf16.msra.mxu0 %v1802_v33  ;;  %1817 = vmatprep.subr.bf16.mxu1 %v1816_v62 }
 0x539   :  { %v1338_v12 = vpop.permute.xlu1 %1337  ;;  %1819 = vmatpush1.bf16.msra.mxu1 %v1818_v6 }
 0x53a   :  { %1350 = vst [vmem:[#allocation2 + $0x48] sm:$0xff] %v1346_v45  ;;  %v1342_v38 = vsel %vm280_vm2, %v1336_v47, %v1338_v12  ;;  %v1340_v40 = vpop.permute.xlu0 %1339 }
 0x53b   :  { %v1347_v63 = vmul.f32 %v1342_v38, %v2137_v56  ;;  %v1341_v31 = vsel %vm280_vm2, %v1338_v12, %v1340_v40  ;;  %v1344_v13 = vsel %vm280_vm2, %v1340_v40, %v1334_v24 }
 0x53c   :  { %v1345_v30 = vmul.f32 %v1344_v13, %v2134_v55  ;;  %v1348_v49 = vmul.f32 %v1341_v31, %v2140_v57 }
 0x53d   :  { %1351 = vst [vmem:[#allocation2 + $0x50] sm:$0xff] %v1347_v63  ;;  %v1354_v29 = vpop.permute.xlu1 %1353 }
 0x53e   :  { %1349 = vst [vmem:[#allocation2 + $0x40] sm:$0xff] %v1345_v30  ;;  %1352 = vst [vmem:[#allocation2 + $0x58] sm:$0xff] %v1348_v49  ;;  %v1356_v41 = vpop.permute.xlu0 %1355 }
 0x53f   :  { %v1363_v32 = vsel %vm301_vm3, %v1354_v29, %v1356_v41 }
 0x540   :  { %v1366_v56 = vmul.f32 %v1363_v32, %v2149_v7 }
 0x541   :  { %v1358_v54 = vpop.permute.xlu1 %1357 }
 0x542   :  { %1370 = vst [vmem:[#allocation2 + $0x68] sm:$0xff] %v1366_v56  ;;  %v1362_v5 = vsel %vm301_vm3, %v1356_v41, %v1358_v54  ;;  %v1360_v35 = vpop.permute.xlu0 %1359  ;;  %v1804_v25 = vpack.c.bf16 %v1366_v56, %v1346_v45 }
 0x543   :  { %v1367_v55 = vmul.f32 %v1362_v5, %v2162_v36  ;;  %v1361_v57 = vsel %vm301_vm3, %v1358_v54, %v1360_v35  ;;  %v1364_v2 = vsel %vm301_vm3, %v1360_v35, %v1354_v29  ;;  %v1862_v35 = vld [vmem:[%s2880_s1 + $0x20] ss:$0 sm:$0xff] }
 0x544   :  { %v1365_v20 = vmul.f32 %v1364_v2, %v2158_v34  ;;  %v1368_v26 = vmul.f32 %v1361_v57, %v2165_v37  ;;  %1805 = vmatprep.subr.bf16.mxu0 %v1804_v25  ;;  %v1863_v57 = vld [vmem:[%s2880_s1 + $0x28] ss:$0 sm:$0xff] }
 0x545   :  { %1371 = vst [vmem:[#allocation2 + $0x70] sm:$0xff] %v1367_v55  ;;  %v1378_v7 = vpop.permute.xlu1 %1377  ;;  %v1822_v52 = vpack.c.bf16 %v1367_v55, %v1347_v63 }
 0x546   :  { %1369 = vst [vmem:[#allocation2 + $0x60] sm:$0xff] %v1365_v20  ;;  %1372 = vst [vmem:[#allocation2 + $0x78] sm:$0xff] %v1368_v26  ;;  %v1380_v8 = vpop.permute.xlu0 %1379  ;;  %v1806_v21 = vpack.c.bf16 %v1365_v20, %v1345_v30  ;;  %v1820_v16 = vpack.c.bf16 %v1368_v26, %v1348_v49 }
 0x547   :  { %v1387_v36 = vsel %vm326_vm4, %v1378_v7, %v1380_v8 }
 0x548   :  { %v1389_v15 = vmul.f32 %v1387_v36, %v2179_v51  ;;  %1807 = vmatpush1.bf16.msra.mxu0 %v1806_v21  ;;  %1821 = vmatprep.subr.bf16.mxu1 %v1820_v16  ;;  %v1865_v21 = vld [vmem:[%s2880_s1 + $0x38] ss:$0 sm:$0xff]  ;;  %v1292_v36 = vld [vmem:[%s2885_s6] sm:$0x7] }
 0x549   :  { %v1382_v22 = vpop.permute.xlu1 %1381  ;;  %1823 = vmatpush1.bf16.msra.mxu1 %v1822_v52 }
 0x54a   :  { %1393 = vst [vmem:[#allocation2 + $0xa0] sm:$0xff] %v1389_v15  ;;  %v1386_v34 = vsel %vm326_vm4, %v1380_v8, %v1382_v22  ;;  %v1384_v37 = vpop.permute.xlu0 %1383  ;;  %v1810_v33 = vpack.c.bf16 %v1389_v15, %v2673_v42 }
 0x54b   :  { %v1390_v18 = vmul.f32 %v1386_v34, %v2188_v60  ;;  %v1385_v19 = vsel %vm326_vm4, %v1382_v22, %v1384_v37  ;;  %v1388_v11 = vsel %vm326_vm4, %v1384_v37, %v1378_v7  ;;  %v1864_v7 = vld [vmem:[%s2880_s1 + $0x30] ss:$0 sm:$0xff] }
 0x54c   :  { %v1391_v28 = vmul.f32 %v1385_v19, %v2191_v61  ;;  %v1392_v51 = vmul.f32 %v1388_v11, %v2184_v58 }
 0x54d   :  { %1394 = vst [vmem:[#allocation2 + $0xa8] sm:$0xff] %v1390_v18  ;;  %v1398_v53 = vpop.permute.xlu1 %1397  ;;  %v1808_v24 = vpack.c.bf16 %v1390_v18, %v2676_v23 }
 0x54e   :  { %1395 = vst [vmem:[#allocation2 + $0xb0] sm:$0xff] %v1391_v28  ;;  %1396 = vst [vmem:[#allocation2 + $0xb8] sm:$0xff] %v1392_v51  ;;  %v1400_v47 = vpop.permute.xlu0 %1399  ;;  %v1824_v60 = vpack.c.bf16 %v1392_v51, %v2683_v59  ;;  %v1826_v62 = vpack.c.bf16 %v1391_v28, %v2679_v14 }
 0x54f   :  { %v1407_v39 = vsel %vm347_vm5, %v1398_v53, %v1400_v47  ;;  %1809 = vmatprep.subr.bf16.mxu0 %v1808_v24 }
 0x550   :  { %v1409_v61 = vmul.f32 %v1407_v39, %v2205_v27  ;;  %1811 = vmatpush1.bf16.msra.mxu0 %v1810_v33  ;;  %1825 = vmatprep.subr.bf16.mxu1 %v1824_v60 }
 0x551   :  { %v1402_v58 = vpop.permute.xlu1 %1401  ;;  %1827 = vmatpush1.bf16.msra.mxu1 %v1826_v62 }
 0x552   :  { %1413 = vst [vmem:[#allocation2 + $0xc0] sm:$0xff] %v1409_v61  ;;  %v1406_v23 = vsel %vm347_vm5, %v1400_v47, %v1402_v58  ;;  %v1404_v6 = vpop.permute.xlu0 %1403 }
 0x553   :  { %v1410_v42 = vmul.f32 %v1406_v23, %v2214_v48  ;;  %v1405_v14 = vsel %vm347_vm5, %v1402_v58, %v1404_v6  ;;  %v1408_v59 = vsel %vm347_vm5, %v1404_v6, %v1398_v53 }
 0x554   :  { %v1411_v45 = vmul.f32 %v1405_v14, %v2217_v50  ;;  %v1412_v27 = vmul.f32 %v1408_v59, %v2210_v46 }
 0x555   :  { %1414 = vst [vmem:[#allocation2 + $0xc8] sm:$0xff] %v1410_v42  ;;  %v1418_v12 = vpop.permute.xlu1 %1417 }
 0x556   :  { %1415 = vst [vmem:[#allocation2 + $0xd0] sm:$0xff] %v1411_v45  ;;  %1416 = vst [vmem:[#allocation2 + $0xd8] sm:$0xff] %v1412_v27  ;;  %v1420_v38 = vpop.permute.xlu0 %1419 }
 0x557   :  { %v1427_v40 = vsel %vm368_vm6, %v1418_v12, %v1420_v38 }
 0x558   :  { %v1429_v48 = vmul.f32 %v1427_v40, %v2231_v17 }
 0x559   :  { %v1422_v63 = vpop.permute.xlu1 %1421 }
 0x55a   :  { %1433 = vst [vmem:[#allocation2 + $0xe0] sm:$0xff] %v1429_v48  ;;  %v1426_v31 = vsel %vm368_vm6, %v1420_v38, %v1422_v63  ;;  %v1424_v13 = vpop.permute.xlu0 %1423  ;;  %v1814_v56 = vpack.c.bf16 %v1429_v48, %v1409_v61 }
 0x55b   :  { %v1430_v50 = vmul.f32 %v1426_v31, %v2240_v43  ;;  %v1425_v46 = vsel %vm368_vm6, %v1422_v63, %v1424_v13  ;;  %v1428_v30 = vsel %vm368_vm6, %v1424_v13, %v1418_v12 }
 0x55c   :  { %v1431_v49 = vmul.f32 %v1425_v46, %v2243_v44  ;;  %v1432_v29 = vmul.f32 %v1428_v30, %v2236_v10 }
 0x55d   :  { %1434 = vst [vmem:[#allocation2 + $0xe8] sm:$0xff] %v1430_v50  ;;  %v1438_v17 = vpop.permute.xlu1 %1437  ;;  %v1812_v41 = vpack.c.bf16 %v1430_v50, %v1410_v42 }
 0x55e   :  { %1435 = vst [vmem:[#allocation2 + $0xf0] sm:$0xff] %v1431_v49  ;;  %1436 = vst [vmem:[#allocation2 + $0xf8] sm:$0xff] %v1432_v29  ;;  %v1440_v32 = vpop.permute.xlu0 %1439  ;;  %v1828_v54 = vpack.c.bf16 %v1432_v29, %v1412_v27  ;;  %v1830_v5 = vpack.c.bf16 %v1431_v49, %v1411_v45 }
 0x55f   :  { %v1447_v43 = vsel %vm389_vm7, %v1438_v17, %v1440_v32  ;;  %1813 = vmatprep.subr.bf16.mxu0 %v1812_v41 }
 0x560   :  { %v1449_v44 = vmul.f32 %v1862_v35, %v1447_v43  ;;  %1815 = vmatpush1.bf16.msra.mxu0 %v1814_v56  ;;  %1829 = vmatprep.subr.bf16.mxu1 %v1828_v54 }
 0x561   :  { %v1442_v10 = vpop.permute.xlu1 %1441  ;;  %1831 = vmatpush1.bf16.msra.mxu1 %v1830_v5 }
 0x562   :  { %1453 = vst [vmem:[#allocation2 + $0x100] sm:$0xff] %v1449_v44  ;;  %v1446_v25 = vsel %vm389_vm7, %v1440_v32, %v1442_v10  ;;  %v1444_v55 = vpop.permute.xlu0 %1443 }
 0x563   :  { %v1450_v2 = vmul.f32 %v1863_v57, %v1446_v25  ;;  %v1445_v20 = vsel %vm389_vm7, %v1442_v10, %v1444_v55  ;;  %v1448_v26 = vsel %vm389_vm7, %v1444_v55, %v1438_v17 }
 0x564   :  { %v1451_v8 = vmul.f32 %v1864_v7, %v1445_v20  ;;  %v1452_v16 = vmul.f32 %v1865_v21, %v1448_v26 }
 0x565   :  { %1454 = vst [vmem:[#allocation2 + $0x108] sm:$0xff] %v1450_v2  ;;  %1512 = vmatprep.subr.mxu0 %v1450_v2 }
 0x566   :  { %1455 = vst [vmem:[#allocation2 + $0x110] sm:$0xff] %v1451_v8  ;;  %1456 = vst [vmem:[#allocation2 + $0x118] sm:$0xff] %v1452_v16  ;;  %1513 = vmatpush1.msra.mxu0 %v1449_v44  ;;  %1583 = vmatprep.subr.mxu1 %v1452_v16 }
 0x567   :  { %1698 = vmatmul.mubr.msk.f32.vlgmr.msra.gmra.mrb[6].mxu0 %vm438_vm8, %v1292_v36  ;;  %1584 = vmatpush1.msra.mxu1 %v1451_v8 }
 0x568   :  { %1699 = vmatmul.mubr.msk.f32.vlgmr.msra.gmra.mrb[6].mxu1 %vm438_vm8, %v1292_v36 }
 0x572   :  { %v219_v9 = vpop.permute.xlu1 %218 }
 0x63a   :  { %v1562_v52 = vpop.f32.mrb[6].mxu0 }
 0x63b   :  { %v1633_v15 = vpop.f32.mrb[6].mxu1  ;;  %v1563_v22 = vadd.f32 %v1562_v52, %v219_v9  ;;  %v1564_v34 = vpop.f32.mrb[7].mxu0 }
 0x63c   :  { %v1634_v37 = vadd.f32 %v1633_v15, %v219_v9  ;;  %v1565_v18 = vadd.f32 %v1564_v34, %v219_v9  ;;  %v1635_v19 = vpop.f32.mrb[7].mxu1 }
 0x63d   :  { %v1700_v11 = vmul.f32 -1.442695, %v1563_v22  ;;  %v1636_v28 = vadd.f32 %v1635_v19, %v219_v9 }
 0x63e   :  { %v1702_v51 = vmul.f32 -1.442695, %v1634_v37  ;;  %v1701_v53 = vmul.f32 -1.442695, %v1565_v18 }
 0x63f   :  { %1846 = vpow2.f32 %v1700_v11  ;;  %v1703_v24 = vmul.f32 -1.442695, %v1636_v28 }
 0x640   :  { %1848 = vpow2.f32 %v1702_v51 }
 0x641   :  { %1850 = vpow2.f32 %v1701_v53 }
 0x642   :  { %1852 = vpow2.f32 %v1703_v24 }
 0x649   :  { %v1847_v47 = vpop.eup %1846 }
 0x64a   :  { %v1849_v33 = vpop.eup %1848  ;;  %v1650_v60 = vadd.f32 1.0, %v1847_v47 }
 0x64b   :  { %v1851_v62 = vpop.eup %1850  ;;  %v1652_v39 = vadd.f32 1.0, %v1849_v33 }
 0x64c   :  { %v1853_v61 = vpop.eup %1852  ;;  %1854 = vrcp.f32 %v1650_v60  ;;  %v1651_v58 = vadd.f32 1.0, %v1851_v62 }
 0x64d   :  { %1856 = vrcp.f32 %v1652_v39  ;;  %v1653_v23 = vadd.f32 1.0, %v1853_v61 }
 0x64e   :  { %1858 = vrcp.f32 %v1651_v58 }
 0x64f   :  { %1860 = vrcp.f32 %v1653_v23 }
 0x656   :  { %v1855_v6 = vpop.eup %1854 }
 0x657   :  { %v1857_v42 = vpop.eup %1856  ;;  %v1662_v14 = vadd.f32 %v1855_v6, %v1929_v1 }
 0x658   :  { %v1859_v59 = vpop.eup %1858  ;;  %v1664_v45 = vadd.f32 %v1857_v42, %v1924_v0 }
 0x659   :  { %v1861_v27 = vpop.eup %1860  ;;  %v1666_v12 = vmax.f32 %v1662_v14, 0.0001  ;;  %v1663_v38 = vadd.f32 %v1859_v59, %v1979_v4 }
 0x65a   :  { %v1668_v40 = vmax.f32 %v1664_v45, 0.0001  ;;  %v1665_v48 = vadd.f32 %v1861_v27, %v1975_v3 }
 0x65b   :  { %v1670_v63 = vmin.f32 %v1666_v12, 1.0  ;;  %v1667_v31 = vmax.f32 %v1663_v38, 0.0001 }
 0x65c   :  { %v1672_v13 = vmin.f32 %v1668_v40, 1.0  ;;  %v1669_v50 = vmax.f32 %v1665_v48, 0.0001 }
 0x65d   :  { %v1671_v46 = vmin.f32 %v1667_v31, 1.0 }
 0x65e   :  { %v1673_v30 = vmin.f32 %v1669_v50, 1.0 }
 0x65f   :  { %v1678_v49 = vcombine.low %v1670_v63, %v1671_v46 }
 0x660   :  { %v1679_v29 = vcombine.low %v1672_v13, %v1673_v30 }
 0x661   :  { %1682 = vst [vmem:[%s2886_s8] sm:$0x77] %v1678_v49 }
 0x662   :  { %1683 = vst [vmem:[%s2886_s8 + $0x8] sm:$0x77] %v1679_v29 }

</bundles_post_ra>
